<compile_context>
chip_gen: v6e
topology: v6e:2x2x1
jax: 0.10.0
libtpu: 0.0.40
codegen_flags: <defaults>
</compile_context>

<pallas_src>
import functools

import jax
import jax.numpy as jnp
from jax.experimental import pallas as pl
from jax.experimental.pallas import tpu as pltpu

# ----------------------------- model dims (small) -----------------------------
B = 2       # batch
T = 8       # sequence length
E = 128     # token-embedding width (lane-dense; real ELMo input is wider)
D = 128     # ELMo representation width (lane-dense; real ELMo: 1024)
V = 128     # vocab size for the synthetic embedding table


def _elmo_kernel(ids_ref,       # SMEM scalar-prefetch: (B*T,) int32 token ids
                 emb_hbm,       # ANY/HBM: (V, E) embedding table (gathered manually)
                 w_ref,         # VMEM: (E, D) projection weight
                 b_ref,         # VMEM: (1, D) projection bias
                 lens_ref,      # VMEM: (B, 1) float32 valid-token counts
                 out_emb_ref,   # VMEM: (B*T, D) contextual embeddings
                 out_avg_ref,   # VMEM: (B, D)   avg-pooled embeddings
                 x_scr,         # VMEM scratch: (B*T, E) gathered token embeddings
                 sem,           # DMA semaphores: (B*T,)
                 *, batch, seq):
    n_rows = batch * seq

    # ---- fused embedding gather: one row DMA per token, all in flight at once.
    for j in range(n_rows):
        pltpu.make_async_copy(
            emb_hbm.at[pl.ds(ids_ref[j], 1), :],   # dynamic row in HBM
            x_scr.at[pl.ds(j, 1), :],
            sem.at[j],
        ).start()
    for j in range(n_rows):
        pltpu.make_async_copy(
            emb_hbm.at[pl.ds(0, 1), :],            # shape-only src for the wait
            x_scr.at[pl.ds(j, 1), :],
            sem.at[j],
        ).wait()

    # ---- projection: bf16 operands on the MXU, f32 accumulation; f32 epilogue.
    xb = x_scr[...].astype(jnp.bfloat16)
    wb = w_ref[...].astype(jnp.bfloat16)
    y = jnp.dot(xb, wb, preferred_element_type=jnp.float32) + b_ref[...]
    out_emb_ref[...] = y                                         # (B*T, D) f32

    # ---- _avg_pool: sum over the sequence axis, multiply by 1/lens.
    s = jnp.sum(y.reshape(batch, seq, -1), axis=1)               # (B, D)
    inv = pl.reciprocal(lens_ref[...], approx=True)              # (B, 1) on EUP
    out_avg_ref[...] = s * inv


def elmo_wrapper_forward(input_ids, lens, emb_table, w_proj, b_proj):
    """Mirrors ELMo_wrapper.forward: returns (embeddings, avg_embeddings, embeddings)."""
    assert lens.shape[0] == input_ids.shape[0]
    assert lens.shape[1] == 1

    batch, seq = input_ids.shape
    emb_e, dim = w_proj.shape
    n_rows = batch * seq

    ids_flat = input_ids.reshape(n_rows).astype(jnp.int32)       # scalar-prefetch
    bias_2d = b_proj.reshape(1, dim)
    lens_f = lens.astype(jnp.float32)                            # (B, 1)

    grid_spec = pltpu.PrefetchScalarGridSpec(
        num_scalar_prefetch=1,
        grid=(1,),                                               # single grid step
        in_specs=[
            pl.BlockSpec(memory_space=pl.ANY),                   # emb_table in HBM
            pl.BlockSpec((emb_e, dim), lambda i, ids: (0, 0)),   # weight (resident)
            pl.BlockSpec((1, dim),     lambda i, ids: (0, 0)),   # bias
            pl.BlockSpec((batch, 1),   lambda i, ids: (0, 0)),   # lens
        ],
        out_specs=[
            pl.BlockSpec((n_rows, dim), lambda i, ids: (0, 0)),  # embeddings (flat)
            pl.BlockSpec((batch, dim),  lambda i, ids: (0, 0)),  # avg embeddings
        ],
        scratch_shapes=[
            pltpu.VMEM((n_rows, emb_e), jnp.float32),            # gathered tokens
            pltpu.SemaphoreType.DMA((n_rows,)),
        ],
    )

    emb_flat, avg_embeddings = pl.pallas_call(
        functools.partial(_elmo_kernel, batch=batch, seq=seq),
        grid_spec=grid_spec,
        out_shape=(
            jax.ShapeDtypeStruct((n_rows, dim), jnp.float32),
            jax.ShapeDtypeStruct((batch, dim), jnp.float32),
        ),
        compiler_params=pltpu.CompilerParams(
            dimension_semantics=("arbitrary",)),
    )(ids_flat, emb_table, w_proj, bias_2d, lens_f)

    embeddings = emb_flat.reshape(batch, seq, dim)
    return (embeddings, avg_embeddings, embeddings)


if __name__ == "__main__":
    key = jax.random.PRNGKey(0)
    k_ids, k_emb, k_w, k_b = jax.random.split(key, 4)

    input_ids = jax.random.randint(k_ids, (B, T), 0, V, dtype=jnp.int32)
    # lens: number of valid tokens per example, shape (B, 1), float for division.
    lens = jnp.array([[5.0], [8.0]], dtype=jnp.float32)

    # Deterministic synthetic parameters (stand-in for the ELMo checkpoint).
    emb_table = jax.random.normal(k_emb, (V, E), dtype=jnp.float32) * 0.1
    w_proj = jax.random.normal(k_w, (E, D), dtype=jnp.float32) * 0.1
    b_proj = jax.random.normal(k_b, (D,), dtype=jnp.float32) * 0.01

    embeddings, avg_embeddings, embeddings2 = jax.block_until_ready(
        elmo_wrapper_forward(input_ids, lens, emb_table, w_proj, b_proj))

    # Reference in plain JAX with the same bf16-rounded dot operands the kernel
    # feeds the MXU (accumulation stays f32 on both sides).
    xq = jnp.take(emb_table, input_ids, axis=0).astype(jnp.bfloat16).astype(jnp.float32)
    wq = w_proj.astype(jnp.bfloat16).astype(jnp.float32)
    ref_emb = jnp.einsum("bte,ed->btd", xq, wq,
                         precision=jax.lax.Precision.HIGHEST) + b_proj
    ref_avg = jnp.sum(ref_emb, axis=1) / lens

    assert embeddings.shape == (B, T, D)
    assert avg_embeddings.shape == (B, D)
    assert jnp.allclose(embeddings, ref_emb, atol=1e-4, rtol=1e-4)
    # Looser tolerance on the average: the kernel uses the EUP approx reciprocal
    # (relative error ~2^-12) instead of an exact lane-wide divide.
    assert jnp.allclose(avg_embeddings, ref_avg, rtol=2e-3, atol=1e-4)
    assert jnp.array_equal(embeddings, embeddings2)

    print("KERNEL_OK")
</pallas_src>

<mosaic_0001>
module attributes {stable_mosaic.version = 11 : i64} {
  func.func @_elmo_kernel(%arg0: i32, %arg1: memref<16xi32, #tpu.memory_space<smem>>, %arg2: memref<128x128xf32, #tpu.memory_space<any>>, %arg3: memref<128x128xf32, #tpu.memory_space<vmem>>, %arg4: memref<1x128xf32, #tpu.memory_space<vmem>>, %arg5: memref<2x1xf32, #tpu.memory_space<vmem>>, %arg6: memref<16x128xf32, #tpu.memory_space<vmem>>, %arg7: memref<2x128xf32, #tpu.memory_space<vmem>>, %arg8: memref<16x128xf32, #tpu.memory_space<vmem>>, %arg9: memref<16x!tpu.dma_semaphore, #tpu.memory_space<semaphore_mem>>) attributes {dimension_semantics = [#tpu.dimension_semantics<arbitrary>], iteration_bounds = array<i64: 1>, scalar_prefetch = 1 : i64, scratch_operands = 2 : i64, tpu.core_type = #tpu.core_type<tc>, window_params = [{}, {pipeline_mode = #tpu.pipeline_mode<synchronous>, transform_indices = @transform_1, window_bounds = array<i64: 128, 128>}, {pipeline_mode = #tpu.pipeline_mode<synchronous>, transform_indices = @transform_2, window_bounds = array<i64: 1, 128>}, {pipeline_mode = #tpu.pipeline_mode<synchronous>, transform_indices = @transform_3, window_bounds = array<i64: 2, 1>}, {pipeline_mode = #tpu.pipeline_mode<synchronous>, transform_indices = @transform_4, window_bounds = array<i64: 16, 128>}, {pipeline_mode = #tpu.pipeline_mode<synchronous>, transform_indices = @transform_5, window_bounds = array<i64: 2, 128>}]} {
    %c0 = arith.constant 0 : index
    %0 = memref.load %arg1[%c0] : memref<16xi32, #tpu.memory_space<smem>>
    %c0_i32 = arith.constant 0 : i32
    %c0_i32_0 = arith.constant 0 : i32
    %1 = tpu.memref_slice %arg2[%0, %c0_i32_0] : memref<128x128xf32, #tpu.memory_space<any>> -> memref<1x128xf32, #tpu.memory_space<any>>
    %c0_i32_1 = arith.constant 0 : i32
    %c0_i32_2 = arith.constant 0 : i32
    %2 = tpu.memref_slice %arg8[%c0_i32_1, %c0_i32_2] : memref<16x128xf32, #tpu.memory_space<vmem>> -> memref<1x128xf32, #tpu.memory_space<vmem>>
    %3 = tpu.memref_slice %arg9[%c0_i32] : memref<16x!tpu.dma_semaphore, #tpu.memory_space<semaphore_mem>> -> memref<1x!tpu.dma_semaphore, #tpu.memory_space<semaphore_mem>>
    %4 = tpu.memref_squeeze %3 : memref<1x!tpu.dma_semaphore, #tpu.memory_space<semaphore_mem>> -> memref<!tpu.dma_semaphore, #tpu.memory_space<semaphore_mem>>
    tpu.enqueue_dma source(%1 : memref<1x128xf32, #tpu.memory_space<any>>) target(%2 : memref<1x128xf32, #tpu.memory_space<vmem>>) target_semaphore(%4 : memref<!tpu.dma_semaphore, #tpu.memory_space<semaphore_mem>>)
    %c1 = arith.constant 1 : index
    %5 = memref.load %arg1[%c1] : memref<16xi32, #tpu.memory_space<smem>>
    %c1_i32 = arith.constant 1 : i32
    %c0_i32_3 = arith.constant 0 : i32
    %6 = tpu.memref_slice %arg2[%5, %c0_i32_3] : memref<128x128xf32, #tpu.memory_space<any>> -> memref<1x128xf32, #tpu.memory_space<any>>
    %c1_i32_4 = arith.constant 1 : i32
    %c0_i32_5 = arith.constant 0 : i32
    %7 = tpu.memref_slice %arg8[%c1_i32_4, %c0_i32_5] : memref<16x128xf32, #tpu.memory_space<vmem>> -> memref<1x128xf32, #tpu.memory_space<vmem>>
    %8 = tpu.memref_slice %arg9[%c1_i32] : memref<16x!tpu.dma_semaphore, #tpu.memory_space<semaphore_mem>> -> memref<1x!tpu.dma_semaphore, #tpu.memory_space<semaphore_mem>>
    %9 = tpu.memref_squeeze %8 : memref<1x!tpu.dma_semaphore, #tpu.memory_space<semaphore_mem>> -> memref<!tpu.dma_semaphore, #tpu.memory_space<semaphore_mem>>
    tpu.enqueue_dma source(%6 : memref<1x128xf32, #tpu.memory_space<any>>) target(%7 : memref<1x128xf32, #tpu.memory_space<vmem>>) target_semaphore(%9 : memref<!tpu.dma_semaphore, #tpu.memory_space<semaphore_mem>>)
    %c2 = arith.constant 2 : index
    %10 = memref.load %arg1[%c2] : memref<16xi32, #tpu.memory_space<smem>>
    %c2_i32 = arith.constant 2 : i32
    %c0_i32_6 = arith.constant 0 : i32
    %11 = tpu.memref_slice %arg2[%10, %c0_i32_6] : memref<128x128xf32, #tpu.memory_space<any>> -> memref<1x128xf32, #tpu.memory_space<any>>
    %c2_i32_7 = arith.constant 2 : i32
    %c0_i32_8 = arith.constant 0 : i32
    %12 = tpu.memref_slice %arg8[%c2_i32_7, %c0_i32_8] : memref<16x128xf32, #tpu.memory_space<vmem>> -> memref<1x128xf32, #tpu.memory_space<vmem>>
    %13 = tpu.memref_slice %arg9[%c2_i32] : memref<16x!tpu.dma_semaphore, #tpu.memory_space<semaphore_mem>> -> memref<1x!tpu.dma_semaphore, #tpu.memory_space<semaphore_mem>>
    %14 = tpu.memref_squeeze %13 : memref<1x!tpu.dma_semaphore, #tpu.memory_space<semaphore_mem>> -> memref<!tpu.dma_semaphore, #tpu.memory_space<semaphore_mem>>
    tpu.enqueue_dma source(%11 : memref<1x128xf32, #tpu.memory_space<any>>) target(%12 : memref<1x128xf32, #tpu.memory_space<vmem>>) target_semaphore(%14 : memref<!tpu.dma_semaphore, #tpu.memory_space<semaphore_mem>>)
    %c3 = arith.constant 3 : index
    %15 = memref.load %arg1[%c3] : memref<16xi32, #tpu.memory_space<smem>>
    %c3_i32 = arith.constant 3 : i32
    %c0_i32_9 = arith.constant 0 : i32
    %16 = tpu.memref_slice %arg2[%15, %c0_i32_9] : memref<128x128xf32, #tpu.memory_space<any>> -> memref<1x128xf32, #tpu.memory_space<any>>
    %c3_i32_10 = arith.constant 3 : i32
    %c0_i32_11 = arith.constant 0 : i32
    %17 = tpu.memref_slice %arg8[%c3_i32_10, %c0_i32_11] : memref<16x128xf32, #tpu.memory_space<vmem>> -> memref<1x128xf32, #tpu.memory_space<vmem>>
    %18 = tpu.memref_slice %arg9[%c3_i32] : memref<16x!tpu.dma_semaphore, #tpu.memory_space<semaphore_mem>> -> memref<1x!tpu.dma_semaphore, #tpu.memory_space<semaphore_mem>>
    %19 = tpu.memref_squeeze %18 : memref<1x!tpu.dma_semaphore, #tpu.memory_space<semaphore_mem>> -> memref<!tpu.dma_semaphore, #tpu.memory_space<semaphore_mem>>
    tpu.enqueue_dma source(%16 : memref<1x128xf32, #tpu.memory_space<any>>) target(%17 : memref<1x128xf32, #tpu.memory_space<vmem>>) target_semaphore(%19 : memref<!tpu.dma_semaphore, #tpu.memory_space<semaphore_mem>>)
    %c4 = arith.constant 4 : index
    %20 = memref.load %arg1[%c4] : memref<16xi32, #tpu.memory_space<smem>>
    %c4_i32 = arith.constant 4 : i32
    %c0_i32_12 = arith.constant 0 : i32
    %21 = tpu.memref_slice %arg2[%20, %c0_i32_12] : memref<128x128xf32, #tpu.memory_space<any>> -> memref<1x128xf32, #tpu.memory_space<any>>
    %c4_i32_13 = arith.constant 4 : i32
    %c0_i32_14 = arith.constant 0 : i32
    %22 = tpu.memref_slice %arg8[%c4_i32_13, %c0_i32_14] : memref<16x128xf32, #tpu.memory_space<vmem>> -> memref<1x128xf32, #tpu.memory_space<vmem>>
    %23 = tpu.memref_slice %arg9[%c4_i32] : memref<16x!tpu.dma_semaphore, #tpu.memory_space<semaphore_mem>> -> memref<1x!tpu.dma_semaphore, #tpu.memory_space<semaphore_mem>>
    %24 = tpu.memref_squeeze %23 : memref<1x!tpu.dma_semaphore, #tpu.memory_space<semaphore_mem>> -> memref<!tpu.dma_semaphore, #tpu.memory_space<semaphore_mem>>
    tpu.enqueue_dma source(%21 : memref<1x128xf32, #tpu.memory_space<any>>) target(%22 : memref<1x128xf32, #tpu.memory_space<vmem>>) target_semaphore(%24 : memref<!tpu.dma_semaphore, #tpu.memory_space<semaphore_mem>>)
    %c5 = arith.constant 5 : index
    %25 = memref.load %arg1[%c5] : memref<16xi32, #tpu.memory_space<smem>>
    %c5_i32 = arith.constant 5 : i32
    %c0_i32_15 = arith.constant 0 : i32
    %26 = tpu.memref_slice %arg2[%25, %c0_i32_15] : memref<128x128xf32, #tpu.memory_space<any>> -> memref<1x128xf32, #tpu.memory_space<any>>
    %c5_i32_16 = arith.constant 5 : i32
    %c0_i32_17 = arith.constant 0 : i32
    %27 = tpu.memref_slice %arg8[%c5_i32_16, %c0_i32_17] : memref<16x128xf32, #tpu.memory_space<vmem>> -> memref<1x128xf32, #tpu.memory_space<vmem>>
    %28 = tpu.memref_slice %arg9[%c5_i32] : memref<16x!tpu.dma_semaphore, #tpu.memory_space<semaphore_mem>> -> memref<1x!tpu.dma_semaphore, #tpu.memory_space<semaphore_mem>>
    %29 = tpu.memref_squeeze %28 : memref<1x!tpu.dma_semaphore, #tpu.memory_space<semaphore_mem>> -> memref<!tpu.dma_semaphore, #tpu.memory_space<semaphore_mem>>
    tpu.enqueue_dma source(%26 : memref<1x128xf32, #tpu.memory_space<any>>) target(%27 : memref<1x128xf32, #tpu.memory_space<vmem>>) target_semaphore(%29 : memref<!tpu.dma_semaphore, #tpu.memory_space<semaphore_mem>>)
    %c6 = arith.constant 6 : index
    %30 = memref.load %arg1[%c6] : memref<16xi32, #tpu.memory_space<smem>>
    %c6_i32 = arith.constant 6 : i32
    %c0_i32_18 = arith.constant 0 : i32
    %31 = tpu.memref_slice %arg2[%30, %c0_i32_18] : memref<128x128xf32, #tpu.memory_space<any>> -> memref<1x128xf32, #tpu.memory_space<any>>
    %c6_i32_19 = arith.constant 6 : i32
    %c0_i32_20 = arith.constant 0 : i32
    %32 = tpu.memref_slice %arg8[%c6_i32_19, %c0_i32_20] : memref<16x128xf32, #tpu.memory_space<vmem>> -> memref<1x128xf32, #tpu.memory_space<vmem>>
    %33 = tpu.memref_slice %arg9[%c6_i32] : memref<16x!tpu.dma_semaphore, #tpu.memory_space<semaphore_mem>> -> memref<1x!tpu.dma_semaphore, #tpu.memory_space<semaphore_mem>>
    %34 = tpu.memref_squeeze %33 : memref<1x!tpu.dma_semaphore, #tpu.memory_space<semaphore_mem>> -> memref<!tpu.dma_semaphore, #tpu.memory_space<semaphore_mem>>
    tpu.enqueue_dma source(%31 : memref<1x128xf32, #tpu.memory_space<any>>) target(%32 : memref<1x128xf32, #tpu.memory_space<vmem>>) target_semaphore(%34 : memref<!tpu.dma_semaphore, #tpu.memory_space<semaphore_mem>>)
    %c7 = arith.constant 7 : index
    %35 = memref.load %arg1[%c7] : memref<16xi32, #tpu.memory_space<smem>>
    %c7_i32 = arith.constant 7 : i32
    %c0_i32_21 = arith.constant 0 : i32
    %36 = tpu.memref_slice %arg2[%35, %c0_i32_21] : memref<128x128xf32, #tpu.memory_space<any>> -> memref<1x128xf32, #tpu.memory_space<any>>
    %c7_i32_22 = arith.constant 7 : i32
    %c0_i32_23 = arith.constant 0 : i32
    %37 = tpu.memref_slice %arg8[%c7_i32_22, %c0_i32_23] : memref<16x128xf32, #tpu.memory_space<vmem>> -> memref<1x128xf32, #tpu.memory_space<vmem>>
    %38 = tpu.memref_slice %arg9[%c7_i32] : memref<16x!tpu.dma_semaphore, #tpu.memory_space<semaphore_mem>> -> memref<1x!tpu.dma_semaphore, #tpu.memory_space<semaphore_mem>>
    %39 = tpu.memref_squeeze %38 : memref<1x!tpu.dma_semaphore, #tpu.memory_space<semaphore_mem>> -> memref<!tpu.dma_semaphore, #tpu.memory_space<semaphore_mem>>
    tpu.enqueue_dma source(%36 : memref<1x128xf32, #tpu.memory_space<any>>) target(%37 : memref<1x128xf32, #tpu.memory_space<vmem>>) target_semaphore(%39 : memref<!tpu.dma_semaphore, #tpu.memory_space<semaphore_mem>>)
    %c8 = arith.constant 8 : index
    %40 = memref.load %arg1[%c8] : memref<16xi32, #tpu.memory_space<smem>>
    %c8_i32 = arith.constant 8 : i32
    %c0_i32_24 = arith.constant 0 : i32
    %41 = tpu.memref_slice %arg2[%40, %c0_i32_24] : memref<128x128xf32, #tpu.memory_space<any>> -> memref<1x128xf32, #tpu.memory_space<any>>
    %c8_i32_25 = arith.constant 8 : i32
    %c0_i32_26 = arith.constant 0 : i32
    %42 = tpu.memref_slice %arg8[%c8_i32_25, %c0_i32_26] : memref<16x128xf32, #tpu.memory_space<vmem>> -> memref<1x128xf32, #tpu.memory_space<vmem>>
    %43 = tpu.memref_slice %arg9[%c8_i32] : memref<16x!tpu.dma_semaphore, #tpu.memory_space<semaphore_mem>> -> memref<1x!tpu.dma_semaphore, #tpu.memory_space<semaphore_mem>>
    %44 = tpu.memref_squeeze %43 : memref<1x!tpu.dma_semaphore, #tpu.memory_space<semaphore_mem>> -> memref<!tpu.dma_semaphore, #tpu.memory_space<semaphore_mem>>
    tpu.enqueue_dma source(%41 : memref<1x128xf32, #tpu.memory_space<any>>) target(%42 : memref<1x128xf32, #tpu.memory_space<vmem>>) target_semaphore(%44 : memref<!tpu.dma_semaphore, #tpu.memory_space<semaphore_mem>>)
    %c9 = arith.constant 9 : index
    %45 = memref.load %arg1[%c9] : memref<16xi32, #tpu.memory_space<smem>>
    %c9_i32 = arith.constant 9 : i32
    %c0_i32_27 = arith.constant 0 : i32
    %46 = tpu.memref_slice %arg2[%45, %c0_i32_27] : memref<128x128xf32, #tpu.memory_space<any>> -> memref<1x128xf32, #tpu.memory_space<any>>
    %c9_i32_28 = arith.constant 9 : i32
    %c0_i32_29 = arith.constant 0 : i32
    %47 = tpu.memref_slice %arg8[%c9_i32_28, %c0_i32_29] : memref<16x128xf32, #tpu.memory_space<vmem>> -> memref<1x128xf32, #tpu.memory_space<vmem>>
    %48 = tpu.memref_slice %arg9[%c9_i32] : memref<16x!tpu.dma_semaphore, #tpu.memory_space<semaphore_mem>> -> memref<1x!tpu.dma_semaphore, #tpu.memory_space<semaphore_mem>>
    %49 = tpu.memref_squeeze %48 : memref<1x!tpu.dma_semaphore, #tpu.memory_space<semaphore_mem>> -> memref<!tpu.dma_semaphore, #tpu.memory_space<semaphore_mem>>
    tpu.enqueue_dma source(%46 : memref<1x128xf32, #tpu.memory_space<any>>) target(%47 : memref<1x128xf32, #tpu.memory_space<vmem>>) target_semaphore(%49 : memref<!tpu.dma_semaphore, #tpu.memory_space<semaphore_mem>>)
    %c10 = arith.constant 10 : index
    %50 = memref.load %arg1[%c10] : memref<16xi32, #tpu.memory_space<smem>>
    %c10_i32 = arith.constant 10 : i32
    %c0_i32_30 = arith.constant 0 : i32
    %51 = tpu.memref_slice %arg2[%50, %c0_i32_30] : memref<128x128xf32, #tpu.memory_space<any>> -> memref<1x128xf32, #tpu.memory_space<any>>
    %c10_i32_31 = arith.constant 10 : i32
    %c0_i32_32 = arith.constant 0 : i32
    %52 = tpu.memref_slice %arg8[%c10_i32_31, %c0_i32_32] : memref<16x128xf32, #tpu.memory_space<vmem>> -> memref<1x128xf32, #tpu.memory_space<vmem>>
    %53 = tpu.memref_slice %arg9[%c10_i32] : memref<16x!tpu.dma_semaphore, #tpu.memory_space<semaphore_mem>> -> memref<1x!tpu.dma_semaphore, #tpu.memory_space<semaphore_mem>>
    %54 = tpu.memref_squeeze %53 : memref<1x!tpu.dma_semaphore, #tpu.memory_space<semaphore_mem>> -> memref<!tpu.dma_semaphore, #tpu.memory_space<semaphore_mem>>
    tpu.enqueue_dma source(%51 : memref<1x128xf32, #tpu.memory_space<any>>) target(%52 : memref<1x128xf32, #tpu.memory_space<vmem>>) target_semaphore(%54 : memref<!tpu.dma_semaphore, #tpu.memory_space<semaphore_mem>>)
    %c11 = arith.constant 11 : index
    %55 = memref.load %arg1[%c11] : memref<16xi32, #tpu.memory_space<smem>>
    %c11_i32 = arith.constant 11 : i32
    %c0_i32_33 = arith.constant 0 : i32
    %56 = tpu.memref_slice %arg2[%55, %c0_i32_33] : memref<128x128xf32, #tpu.memory_space<any>> -> memref<1x128xf32, #tpu.memory_space<any>>
    %c11_i32_34 = arith.constant 11 : i32
    %c0_i32_35 = arith.constant 0 : i32
    %57 = tpu.memref_slice %arg8[%c11_i32_34, %c0_i32_35] : memref<16x128xf32, #tpu.memory_space<vmem>> -> memref<1x128xf32, #tpu.memory_space<vmem>>
    %58 = tpu.memref_slice %arg9[%c11_i32] : memref<16x!tpu.dma_semaphore, #tpu.memory_space<semaphore_mem>> -> memref<1x!tpu.dma_semaphore, #tpu.memory_space<semaphore_mem>>
    %59 = tpu.memref_squeeze %58 : memref<1x!tpu.dma_semaphore, #tpu.memory_space<semaphore_mem>> -> memref<!tpu.dma_semaphore, #tpu.memory_space<semaphore_mem>>
    tpu.enqueue_dma source(%56 : memref<1x128xf32, #tpu.memory_space<any>>) target(%57 : memref<1x128xf32, #tpu.memory_space<vmem>>) target_semaphore(%59 : memref<!tpu.dma_semaphore, #tpu.memory_space<semaphore_mem>>)
    %c12 = arith.constant 12 : index
    %60 = memref.load %arg1[%c12] : memref<16xi32, #tpu.memory_space<smem>>
    %c12_i32 = arith.constant 12 : i32
    %c0_i32_36 = arith.constant 0 : i32
    %61 = tpu.memref_slice %arg2[%60, %c0_i32_36] : memref<128x128xf32, #tpu.memory_space<any>> -> memref<1x128xf32, #tpu.memory_space<any>>
    %c12_i32_37 = arith.constant 12 : i32
    %c0_i32_38 = arith.constant 0 : i32
    %62 = tpu.memref_slice %arg8[%c12_i32_37, %c0_i32_38] : memref<16x128xf32, #tpu.memory_space<vmem>> -> memref<1x128xf32, #tpu.memory_space<vmem>>
    %63 = tpu.memref_slice %arg9[%c12_i32] : memref<16x!tpu.dma_semaphore, #tpu.memory_space<semaphore_mem>> -> memref<1x!tpu.dma_semaphore, #tpu.memory_space<semaphore_mem>>
    %64 = tpu.memref_squeeze %63 : memref<1x!tpu.dma_semaphore, #tpu.memory_space<semaphore_mem>> -> memref<!tpu.dma_semaphore, #tpu.memory_space<semaphore_mem>>
    tpu.enqueue_dma source(%61 : memref<1x128xf32, #tpu.memory_space<any>>) target(%62 : memref<1x128xf32, #tpu.memory_space<vmem>>) target_semaphore(%64 : memref<!tpu.dma_semaphore, #tpu.memory_space<semaphore_mem>>)
    %c13 = arith.constant 13 : index
    %65 = memref.load %arg1[%c13] : memref<16xi32, #tpu.memory_space<smem>>
    %c13_i32 = arith.constant 13 : i32
    %c0_i32_39 = arith.constant 0 : i32
    %66 = tpu.memref_slice %arg2[%65, %c0_i32_39] : memref<128x128xf32, #tpu.memory_space<any>> -> memref<1x128xf32, #tpu.memory_space<any>>
    %c13_i32_40 = arith.constant 13 : i32
    %c0_i32_41 = arith.constant 0 : i32
    %67 = tpu.memref_slice %arg8[%c13_i32_40, %c0_i32_41] : memref<16x128xf32, #tpu.memory_space<vmem>> -> memref<1x128xf32, #tpu.memory_space<vmem>>
    %68 = tpu.memref_slice %arg9[%c13_i32] : memref<16x!tpu.dma_semaphore, #tpu.memory_space<semaphore_mem>> -> memref<1x!tpu.dma_semaphore, #tpu.memory_space<semaphore_mem>>
    %69 = tpu.memref_squeeze %68 : memref<1x!tpu.dma_semaphore, #tpu.memory_space<semaphore_mem>> -> memref<!tpu.dma_semaphore, #tpu.memory_space<semaphore_mem>>
    tpu.enqueue_dma source(%66 : memref<1x128xf32, #tpu.memory_space<any>>) target(%67 : memref<1x128xf32, #tpu.memory_space<vmem>>) target_semaphore(%69 : memref<!tpu.dma_semaphore, #tpu.memory_space<semaphore_mem>>)
    %c14 = arith.constant 14 : index
    %70 = memref.load %arg1[%c14] : memref<16xi32, #tpu.memory_space<smem>>
    %c14_i32 = arith.constant 14 : i32
    %c0_i32_42 = arith.constant 0 : i32
    %71 = tpu.memref_slice %arg2[%70, %c0_i32_42] : memref<128x128xf32, #tpu.memory_space<any>> -> memref<1x128xf32, #tpu.memory_space<any>>
    %c14_i32_43 = arith.constant 14 : i32
    %c0_i32_44 = arith.constant 0 : i32
    %72 = tpu.memref_slice %arg8[%c14_i32_43, %c0_i32_44] : memref<16x128xf32, #tpu.memory_space<vmem>> -> memref<1x128xf32, #tpu.memory_space<vmem>>
    %73 = tpu.memref_slice %arg9[%c14_i32] : memref<16x!tpu.dma_semaphore, #tpu.memory_space<semaphore_mem>> -> memref<1x!tpu.dma_semaphore, #tpu.memory_space<semaphore_mem>>
    %74 = tpu.memref_squeeze %73 : memref<1x!tpu.dma_semaphore, #tpu.memory_space<semaphore_mem>> -> memref<!tpu.dma_semaphore, #tpu.memory_space<semaphore_mem>>
    tpu.enqueue_dma source(%71 : memref<1x128xf32, #tpu.memory_space<any>>) target(%72 : memref<1x128xf32, #tpu.memory_space<vmem>>) target_semaphore(%74 : memref<!tpu.dma_semaphore, #tpu.memory_space<semaphore_mem>>)
    %c15 = arith.constant 15 : index
    %75 = memref.load %arg1[%c15] : memref<16xi32, #tpu.memory_space<smem>>
    %c15_i32 = arith.constant 15 : i32
    %c0_i32_45 = arith.constant 0 : i32
    %76 = tpu.memref_slice %arg2[%75, %c0_i32_45] : memref<128x128xf32, #tpu.memory_space<any>> -> memref<1x128xf32, #tpu.memory_space<any>>
    %c15_i32_46 = arith.constant 15 : i32
    %c0_i32_47 = arith.constant 0 : i32
    %77 = tpu.memref_slice %arg8[%c15_i32_46, %c0_i32_47] : memref<16x128xf32, #tpu.memory_space<vmem>> -> memref<1x128xf32, #tpu.memory_space<vmem>>
    %78 = tpu.memref_slice %arg9[%c15_i32] : memref<16x!tpu.dma_semaphore, #tpu.memory_space<semaphore_mem>> -> memref<1x!tpu.dma_semaphore, #tpu.memory_space<semaphore_mem>>
    %79 = tpu.memref_squeeze %78 : memref<1x!tpu.dma_semaphore, #tpu.memory_space<semaphore_mem>> -> memref<!tpu.dma_semaphore, #tpu.memory_space<semaphore_mem>>
    tpu.enqueue_dma source(%76 : memref<1x128xf32, #tpu.memory_space<any>>) target(%77 : memref<1x128xf32, #tpu.memory_space<vmem>>) target_semaphore(%79 : memref<!tpu.dma_semaphore, #tpu.memory_space<semaphore_mem>>)
    %c0_i32_48 = arith.constant 0 : i32
    %c0_i32_49 = arith.constant 0 : i32
    %c0_i32_50 = arith.constant 0 : i32
    %80 = tpu.memref_slice %arg2[%c0_i32_49, %c0_i32_50] : memref<128x128xf32, #tpu.memory_space<any>> -> memref<1x128xf32, #tpu.memory_space<any>>
    %c0_i32_51 = arith.constant 0 : i32
    %c0_i32_52 = arith.constant 0 : i32
    %81 = tpu.memref_slice %arg8[%c0_i32_51, %c0_i32_52] : memref<16x128xf32, #tpu.memory_space<vmem>> -> memref<1x128xf32, #tpu.memory_space<vmem>>
    %82 = tpu.memref_slice %arg9[%c0_i32_48] : memref<16x!tpu.dma_semaphore, #tpu.memory_space<semaphore_mem>> -> memref<1x!tpu.dma_semaphore, #tpu.memory_space<semaphore_mem>>
    %83 = tpu.memref_squeeze %82 : memref<1x!tpu.dma_semaphore, #tpu.memory_space<semaphore_mem>> -> memref<!tpu.dma_semaphore, #tpu.memory_space<semaphore_mem>>
    tpu.wait_dma2 semaphore(%83 : memref<!tpu.dma_semaphore, #tpu.memory_space<semaphore_mem>>) src(%80 : memref<1x128xf32, #tpu.memory_space<any>>) dst(%81 : memref<1x128xf32, #tpu.memory_space<vmem>>)
    %c1_i32_53 = arith.constant 1 : i32
    %c0_i32_54 = arith.constant 0 : i32
    %c0_i32_55 = arith.constant 0 : i32
    %84 = tpu.memref_slice %arg2[%c0_i32_54, %c0_i32_55] : memref<128x128xf32, #tpu.memory_space<any>> -> memref<1x128xf32, #tpu.memory_space<any>>
    %c1_i32_56 = arith.constant 1 : i32
    %c0_i32_57 = arith.constant 0 : i32
    %85 = tpu.memref_slice %arg8[%c1_i32_56, %c0_i32_57] : memref<16x128xf32, #tpu.memory_space<vmem>> -> memref<1x128xf32, #tpu.memory_space<vmem>>
    %86 = tpu.memref_slice %arg9[%c1_i32_53] : memref<16x!tpu.dma_semaphore, #tpu.memory_space<semaphore_mem>> -> memref<1x!tpu.dma_semaphore, #tpu.memory_space<semaphore_mem>>
    %87 = tpu.memref_squeeze %86 : memref<1x!tpu.dma_semaphore, #tpu.memory_space<semaphore_mem>> -> memref<!tpu.dma_semaphore, #tpu.memory_space<semaphore_mem>>
    tpu.wait_dma2 semaphore(%87 : memref<!tpu.dma_semaphore, #tpu.memory_space<semaphore_mem>>) src(%84 : memref<1x128xf32, #tpu.memory_space<any>>) dst(%85 : memref<1x128xf32, #tpu.memory_space<vmem>>)
    %c2_i32_58 = arith.constant 2 : i32
    %c0_i32_59 = arith.constant 0 : i32
    %c0_i32_60 = arith.constant 0 : i32
    %88 = tpu.memref_slice %arg2[%c0_i32_59, %c0_i32_60] : memref<128x128xf32, #tpu.memory_space<any>> -> memref<1x128xf32, #tpu.memory_space<any>>
    %c2_i32_61 = arith.constant 2 : i32
    %c0_i32_62 = arith.constant 0 : i32
    %89 = tpu.memref_slice %arg8[%c2_i32_61, %c0_i32_62] : memref<16x128xf32, #tpu.memory_space<vmem>> -> memref<1x128xf32, #tpu.memory_space<vmem>>
    %90 = tpu.memref_slice %arg9[%c2_i32_58] : memref<16x!tpu.dma_semaphore, #tpu.memory_space<semaphore_mem>> -> memref<1x!tpu.dma_semaphore, #tpu.memory_space<semaphore_mem>>
    %91 = tpu.memref_squeeze %90 : memref<1x!tpu.dma_semaphore, #tpu.memory_space<semaphore_mem>> -> memref<!tpu.dma_semaphore, #tpu.memory_space<semaphore_mem>>
    tpu.wait_dma2 semaphore(%91 : memref<!tpu.dma_semaphore, #tpu.memory_space<semaphore_mem>>) src(%88 : memref<1x128xf32, #tpu.memory_space<any>>) dst(%89 : memref<1x128xf32, #tpu.memory_space<vmem>>)
    %c3_i32_63 = arith.constant 3 : i32
    %c0_i32_64 = arith.constant 0 : i32
    %c0_i32_65 = arith.constant 0 : i32
    %92 = tpu.memref_slice %arg2[%c0_i32_64, %c0_i32_65] : memref<128x128xf32, #tpu.memory_space<any>> -> memref<1x128xf32, #tpu.memory_space<any>>
    %c3_i32_66 = arith.constant 3 : i32
    %c0_i32_67 = arith.constant 0 : i32
    %93 = tpu.memref_slice %arg8[%c3_i32_66, %c0_i32_67] : memref<16x128xf32, #tpu.memory_space<vmem>> -> memref<1x128xf32, #tpu.memory_space<vmem>>
    %94 = tpu.memref_slice %arg9[%c3_i32_63] : memref<16x!tpu.dma_semaphore, #tpu.memory_space<semaphore_mem>> -> memref<1x!tpu.dma_semaphore, #tpu.memory_space<semaphore_mem>>
    %95 = tpu.memref_squeeze %94 : memref<1x!tpu.dma_semaphore, #tpu.memory_space<semaphore_mem>> -> memref<!tpu.dma_semaphore, #tpu.memory_space<semaphore_mem>>
    tpu.wait_dma2 semaphore(%95 : memref<!tpu.dma_semaphore, #tpu.memory_space<semaphore_mem>>) src(%92 : memref<1x128xf32, #tpu.memory_space<any>>) dst(%93 : memref<1x128xf32, #tpu.memory_space<vmem>>)
    %c4_i32_68 = arith.constant 4 : i32
    %c0_i32_69 = arith.constant 0 : i32
    %c0_i32_70 = arith.constant 0 : i32
    %96 = tpu.memref_slice %arg2[%c0_i32_69, %c0_i32_70] : memref<128x128xf32, #tpu.memory_space<any>> -> memref<1x128xf32, #tpu.memory_space<any>>
    %c4_i32_71 = arith.constant 4 : i32
    %c0_i32_72 = arith.constant 0 : i32
    %97 = tpu.memref_slice %arg8[%c4_i32_71, %c0_i32_72] : memref<16x128xf32, #tpu.memory_space<vmem>> -> memref<1x128xf32, #tpu.memory_space<vmem>>
    %98 = tpu.memref_slice %arg9[%c4_i32_68] : memref<16x!tpu.dma_semaphore, #tpu.memory_space<semaphore_mem>> -> memref<1x!tpu.dma_semaphore, #tpu.memory_space<semaphore_mem>>
    %99 = tpu.memref_squeeze %98 : memref<1x!tpu.dma_semaphore, #tpu.memory_space<semaphore_mem>> -> memref<!tpu.dma_semaphore, #tpu.memory_space<semaphore_mem>>
    tpu.wait_dma2 semaphore(%99 : memref<!tpu.dma_semaphore, #tpu.memory_space<semaphore_mem>>) src(%96 : memref<1x128xf32, #tpu.memory_space<any>>) dst(%97 : memref<1x128xf32, #tpu.memory_space<vmem>>)
    %c5_i32_73 = arith.constant 5 : i32
    %c0_i32_74 = arith.constant 0 : i32
    %c0_i32_75 = arith.constant 0 : i32
    %100 = tpu.memref_slice %arg2[%c0_i32_74, %c0_i32_75] : memref<128x128xf32, #tpu.memory_space<any>> -> memref<1x128xf32, #tpu.memory_space<any>>
    %c5_i32_76 = arith.constant 5 : i32
    %c0_i32_77 = arith.constant 0 : i32
    %101 = tpu.memref_slice %arg8[%c5_i32_76, %c0_i32_77] : memref<16x128xf32, #tpu.memory_space<vmem>> -> memref<1x128xf32, #tpu.memory_space<vmem>>
    %102 = tpu.memref_slice %arg9[%c5_i32_73] : memref<16x!tpu.dma_semaphore, #tpu.memory_space<semaphore_mem>> -> memref<1x!tpu.dma_semaphore, #tpu.memory_space<semaphore_mem>>
    %103 = tpu.memref_squeeze %102 : memref<1x!tpu.dma_semaphore, #tpu.memory_space<semaphore_mem>> -> memref<!tpu.dma_semaphore, #tpu.memory_space<semaphore_mem>>
    tpu.wait_dma2 semaphore(%103 : memref<!tpu.dma_semaphore, #tpu.memory_space<semaphore_mem>>) src(%100 : memref<1x128xf32, #tpu.memory_space<any>>) dst(%101 : memref<1x128xf32, #tpu.memory_space<vmem>>)
    %c6_i32_78 = arith.constant 6 : i32
    %c0_i32_79 = arith.constant 0 : i32
    %c0_i32_80 = arith.constant 0 : i32
    %104 = tpu.memref_slice %arg2[%c0_i32_79, %c0_i32_80] : memref<128x128xf32, #tpu.memory_space<any>> -> memref<1x128xf32, #tpu.memory_space<any>>
    %c6_i32_81 = arith.constant 6 : i32
    %c0_i32_82 = arith.constant 0 : i32
    %105 = tpu.memref_slice %arg8[%c6_i32_81, %c0_i32_82] : memref<16x128xf32, #tpu.memory_space<vmem>> -> memref<1x128xf32, #tpu.memory_space<vmem>>
    %106 = tpu.memref_slice %arg9[%c6_i32_78] : memref<16x!tpu.dma_semaphore, #tpu.memory_space<semaphore_mem>> -> memref<1x!tpu.dma_semaphore, #tpu.memory_space<semaphore_mem>>
    %107 = tpu.memref_squeeze %106 : memref<1x!tpu.dma_semaphore, #tpu.memory_space<semaphore_mem>> -> memref<!tpu.dma_semaphore, #tpu.memory_space<semaphore_mem>>
    tpu.wait_dma2 semaphore(%107 : memref<!tpu.dma_semaphore, #tpu.memory_space<semaphore_mem>>) src(%104 : memref<1x128xf32, #tpu.memory_space<any>>) dst(%105 : memref<1x128xf32, #tpu.memory_space<vmem>>)
    %c7_i32_83 = arith.constant 7 : i32
    %c0_i32_84 = arith.constant 0 : i32
    %c0_i32_85 = arith.constant 0 : i32
    %108 = tpu.memref_slice %arg2[%c0_i32_84, %c0_i32_85] : memref<128x128xf32, #tpu.memory_space<any>> -> memref<1x128xf32, #tpu.memory_space<any>>
    %c7_i32_86 = arith.constant 7 : i32
    %c0_i32_87 = arith.constant 0 : i32
    %109 = tpu.memref_slice %arg8[%c7_i32_86, %c0_i32_87] : memref<16x128xf32, #tpu.memory_space<vmem>> -> memref<1x128xf32, #tpu.memory_space<vmem>>
    %110 = tpu.memref_slice %arg9[%c7_i32_83] : memref<16x!tpu.dma_semaphore, #tpu.memory_space<semaphore_mem>> -> memref<1x!tpu.dma_semaphore, #tpu.memory_space<semaphore_mem>>
    %111 = tpu.memref_squeeze %110 : memref<1x!tpu.dma_semaphore, #tpu.memory_space<semaphore_mem>> -> memref<!tpu.dma_semaphore, #tpu.memory_space<semaphore_mem>>
    tpu.wait_dma2 semaphore(%111 : memref<!tpu.dma_semaphore, #tpu.memory_space<semaphore_mem>>) src(%108 : memref<1x128xf32, #tpu.memory_space<any>>) dst(%109 : memref<1x128xf32, #tpu.memory_space<vmem>>)
    %c8_i32_88 = arith.constant 8 : i32
    %c0_i32_89 = arith.constant 0 : i32
    %c0_i32_90 = arith.constant 0 : i32
    %112 = tpu.memref_slice %arg2[%c0_i32_89, %c0_i32_90] : memref<128x128xf32, #tpu.memory_space<any>> -> memref<1x128xf32, #tpu.memory_space<any>>
    %c8_i32_91 = arith.constant 8 : i32
    %c0_i32_92 = arith.constant 0 : i32
    %113 = tpu.memref_slice %arg8[%c8_i32_91, %c0_i32_92] : memref<16x128xf32, #tpu.memory_space<vmem>> -> memref<1x128xf32, #tpu.memory_space<vmem>>
    %114 = tpu.memref_slice %arg9[%c8_i32_88] : memref<16x!tpu.dma_semaphore, #tpu.memory_space<semaphore_mem>> -> memref<1x!tpu.dma_semaphore, #tpu.memory_space<semaphore_mem>>
    %115 = tpu.memref_squeeze %114 : memref<1x!tpu.dma_semaphore, #tpu.memory_space<semaphore_mem>> -> memref<!tpu.dma_semaphore, #tpu.memory_space<semaphore_mem>>
    tpu.wait_dma2 semaphore(%115 : memref<!tpu.dma_semaphore, #tpu.memory_space<semaphore_mem>>) src(%112 : memref<1x128xf32, #tpu.memory_space<any>>) dst(%113 : memref<1x128xf32, #tpu.memory_space<vmem>>)
    %c9_i32_93 = arith.constant 9 : i32
    %c0_i32_94 = arith.constant 0 : i32
    %c0_i32_95 = arith.constant 0 : i32
    %116 = tpu.memref_slice %arg2[%c0_i32_94, %c0_i32_95] : memref<128x128xf32, #tpu.memory_space<any>> -> memref<1x128xf32, #tpu.memory_space<any>>
    %c9_i32_96 = arith.constant 9 : i32
    %c0_i32_97 = arith.constant 0 : i32
    %117 = tpu.memref_slice %arg8[%c9_i32_96, %c0_i32_97] : memref<16x128xf32, #tpu.memory_space<vmem>> -> memref<1x128xf32, #tpu.memory_space<vmem>>
    %118 = tpu.memref_slice %arg9[%c9_i32_93] : memref<16x!tpu.dma_semaphore, #tpu.memory_space<semaphore_mem>> -> memref<1x!tpu.dma_semaphore, #tpu.memory_space<semaphore_mem>>
    %119 = tpu.memref_squeeze %118 : memref<1x!tpu.dma_semaphore, #tpu.memory_space<semaphore_mem>> -> memref<!tpu.dma_semaphore, #tpu.memory_space<semaphore_mem>>
    tpu.wait_dma2 semaphore(%119 : memref<!tpu.dma_semaphore, #tpu.memory_space<semaphore_mem>>) src(%116 : memref<1x128xf32, #tpu.memory_space<any>>) dst(%117 : memref<1x128xf32, #tpu.memory_space<vmem>>)
    %c10_i32_98 = arith.constant 10 : i32
    %c0_i32_99 = arith.constant 0 : i32
    %c0_i32_100 = arith.constant 0 : i32
    %120 = tpu.memref_slice %arg2[%c0_i32_99, %c0_i32_100] : memref<128x128xf32, #tpu.memory_space<any>> -> memref<1x128xf32, #tpu.memory_space<any>>
    %c10_i32_101 = arith.constant 10 : i32
    %c0_i32_102 = arith.constant 0 : i32
    %121 = tpu.memref_slice %arg8[%c10_i32_101, %c0_i32_102] : memref<16x128xf32, #tpu.memory_space<vmem>> -> memref<1x128xf32, #tpu.memory_space<vmem>>
    %122 = tpu.memref_slice %arg9[%c10_i32_98] : memref<16x!tpu.dma_semaphore, #tpu.memory_space<semaphore_mem>> -> memref<1x!tpu.dma_semaphore, #tpu.memory_space<semaphore_mem>>
    %123 = tpu.memref_squeeze %122 : memref<1x!tpu.dma_semaphore, #tpu.memory_space<semaphore_mem>> -> memref<!tpu.dma_semaphore, #tpu.memory_space<semaphore_mem>>
    tpu.wait_dma2 semaphore(%123 : memref<!tpu.dma_semaphore, #tpu.memory_space<semaphore_mem>>) src(%120 : memref<1x128xf32, #tpu.memory_space<any>>) dst(%121 : memref<1x128xf32, #tpu.memory_space<vmem>>)
    %c11_i32_103 = arith.constant 11 : i32
    %c0_i32_104 = arith.constant 0 : i32
    %c0_i32_105 = arith.constant 0 : i32
    %124 = tpu.memref_slice %arg2[%c0_i32_104, %c0_i32_105] : memref<128x128xf32, #tpu.memory_space<any>> -> memref<1x128xf32, #tpu.memory_space<any>>
    %c11_i32_106 = arith.constant 11 : i32
    %c0_i32_107 = arith.constant 0 : i32
    %125 = tpu.memref_slice %arg8[%c11_i32_106, %c0_i32_107] : memref<16x128xf32, #tpu.memory_space<vmem>> -> memref<1x128xf32, #tpu.memory_space<vmem>>
    %126 = tpu.memref_slice %arg9[%c11_i32_103] : memref<16x!tpu.dma_semaphore, #tpu.memory_space<semaphore_mem>> -> memref<1x!tpu.dma_semaphore, #tpu.memory_space<semaphore_mem>>
    %127 = tpu.memref_squeeze %126 : memref<1x!tpu.dma_semaphore, #tpu.memory_space<semaphore_mem>> -> memref<!tpu.dma_semaphore, #tpu.memory_space<semaphore_mem>>
    tpu.wait_dma2 semaphore(%127 : memref<!tpu.dma_semaphore, #tpu.memory_space<semaphore_mem>>) src(%124 : memref<1x128xf32, #tpu.memory_space<any>>) dst(%125 : memref<1x128xf32, #tpu.memory_space<vmem>>)
    %c12_i32_108 = arith.constant 12 : i32
    %c0_i32_109 = arith.constant 0 : i32
    %c0_i32_110 = arith.constant 0 : i32
    %128 = tpu.memref_slice %arg2[%c0_i32_109, %c0_i32_110] : memref<128x128xf32, #tpu.memory_space<any>> -> memref<1x128xf32, #tpu.memory_space<any>>
    %c12_i32_111 = arith.constant 12 : i32
    %c0_i32_112 = arith.constant 0 : i32
    %129 = tpu.memref_slice %arg8[%c12_i32_111, %c0_i32_112] : memref<16x128xf32, #tpu.memory_space<vmem>> -> memref<1x128xf32, #tpu.memory_space<vmem>>
    %130 = tpu.memref_slice %arg9[%c12_i32_108] : memref<16x!tpu.dma_semaphore, #tpu.memory_space<semaphore_mem>> -> memref<1x!tpu.dma_semaphore, #tpu.memory_space<semaphore_mem>>
    %131 = tpu.memref_squeeze %130 : memref<1x!tpu.dma_semaphore, #tpu.memory_space<semaphore_mem>> -> memref<!tpu.dma_semaphore, #tpu.memory_space<semaphore_mem>>
    tpu.wait_dma2 semaphore(%131 : memref<!tpu.dma_semaphore, #tpu.memory_space<semaphore_mem>>) src(%128 : memref<1x128xf32, #tpu.memory_space<any>>) dst(%129 : memref<1x128xf32, #tpu.memory_space<vmem>>)
    %c13_i32_113 = arith.constant 13 : i32
    %c0_i32_114 = arith.constant 0 : i32
    %c0_i32_115 = arith.constant 0 : i32
    %132 = tpu.memref_slice %arg2[%c0_i32_114, %c0_i32_115] : memref<128x128xf32, #tpu.memory_space<any>> -> memref<1x128xf32, #tpu.memory_space<any>>
    %c13_i32_116 = arith.constant 13 : i32
    %c0_i32_117 = arith.constant 0 : i32
    %133 = tpu.memref_slice %arg8[%c13_i32_116, %c0_i32_117] : memref<16x128xf32, #tpu.memory_space<vmem>> -> memref<1x128xf32, #tpu.memory_space<vmem>>
    %134 = tpu.memref_slice %arg9[%c13_i32_113] : memref<16x!tpu.dma_semaphore, #tpu.memory_space<semaphore_mem>> -> memref<1x!tpu.dma_semaphore, #tpu.memory_space<semaphore_mem>>
    %135 = tpu.memref_squeeze %134 : memref<1x!tpu.dma_semaphore, #tpu.memory_space<semaphore_mem>> -> memref<!tpu.dma_semaphore, #tpu.memory_space<semaphore_mem>>
    tpu.wait_dma2 semaphore(%135 : memref<!tpu.dma_semaphore, #tpu.memory_space<semaphore_mem>>) src(%132 : memref<1x128xf32, #tpu.memory_space<any>>) dst(%133 : memref<1x128xf32, #tpu.memory_space<vmem>>)
    %c14_i32_118 = arith.constant 14 : i32
    %c0_i32_119 = arith.constant 0 : i32
    %c0_i32_120 = arith.constant 0 : i32
    %136 = tpu.memref_slice %arg2[%c0_i32_119, %c0_i32_120] : memref<128x128xf32, #tpu.memory_space<any>> -> memref<1x128xf32, #tpu.memory_space<any>>
    %c14_i32_121 = arith.constant 14 : i32
    %c0_i32_122 = arith.constant 0 : i32
    %137 = tpu.memref_slice %arg8[%c14_i32_121, %c0_i32_122] : memref<16x128xf32, #tpu.memory_space<vmem>> -> memref<1x128xf32, #tpu.memory_space<vmem>>
    %138 = tpu.memref_slice %arg9[%c14_i32_118] : memref<16x!tpu.dma_semaphore, #tpu.memory_space<semaphore_mem>> -> memref<1x!tpu.dma_semaphore, #tpu.memory_space<semaphore_mem>>
    %139 = tpu.memref_squeeze %138 : memref<1x!tpu.dma_semaphore, #tpu.memory_space<semaphore_mem>> -> memref<!tpu.dma_semaphore, #tpu.memory_space<semaphore_mem>>
    tpu.wait_dma2 semaphore(%139 : memref<!tpu.dma_semaphore, #tpu.memory_space<semaphore_mem>>) src(%136 : memref<1x128xf32, #tpu.memory_space<any>>) dst(%137 : memref<1x128xf32, #tpu.memory_space<vmem>>)
    %c15_i32_123 = arith.constant 15 : i32
    %c0_i32_124 = arith.constant 0 : i32
    %c0_i32_125 = arith.constant 0 : i32
    %140 = tpu.memref_slice %arg2[%c0_i32_124, %c0_i32_125] : memref<128x128xf32, #tpu.memory_space<any>> -> memref<1x128xf32, #tpu.memory_space<any>>
    %c15_i32_126 = arith.constant 15 : i32
    %c0_i32_127 = arith.constant 0 : i32
    %141 = tpu.memref_slice %arg8[%c15_i32_126, %c0_i32_127] : memref<16x128xf32, #tpu.memory_space<vmem>> -> memref<1x128xf32, #tpu.memory_space<vmem>>
    %142 = tpu.memref_slice %arg9[%c15_i32_123] : memref<16x!tpu.dma_semaphore, #tpu.memory_space<semaphore_mem>> -> memref<1x!tpu.dma_semaphore, #tpu.memory_space<semaphore_mem>>
    %143 = tpu.memref_squeeze %142 : memref<1x!tpu.dma_semaphore, #tpu.memory_space<semaphore_mem>> -> memref<!tpu.dma_semaphore, #tpu.memory_space<semaphore_mem>>
    tpu.wait_dma2 semaphore(%143 : memref<!tpu.dma_semaphore, #tpu.memory_space<semaphore_mem>>) src(%140 : memref<1x128xf32, #tpu.memory_space<any>>) dst(%141 : memref<1x128xf32, #tpu.memory_space<vmem>>)
    %c0_128 = arith.constant 0 : index
    %c0_129 = arith.constant 0 : index
    %144 = vector.load %arg8[%c0_128, %c0_129] : memref<16x128xf32, #tpu.memory_space<vmem>>, vector<16x128xf32>
    %145 = arith.truncf %144 : vector<16x128xf32> to vector<16x128xbf16>
    %c0_130 = arith.constant 0 : index
    %c0_131 = arith.constant 0 : index
    %146 = vector.load %arg3[%c0_130, %c0_131] : memref<128x128xf32, #tpu.memory_space<vmem>>, vector<128x128xf32>
    %147 = arith.truncf %146 : vector<128x128xf32> to vector<128x128xbf16>
    %cst = arith.constant dense<0.000000e+00> : vector<16x128xf32>
    %148 = tpu.matmul %145, %147, %cst {dimension_numbers = #tpu.dot_dimension_numbers<[1], [0], [0], [1], [0, 0, 1, 1], [], []>} : vector<16x128xbf16>, vector<128x128xbf16>, vector<16x128xf32> -> vector<16x128xf32>
    %c0_132 = arith.constant 0 : index
    %c0_133 = arith.constant 0 : index
    %149 = vector.load %arg4[%c0_132, %c0_133] : memref<1x128xf32, #tpu.memory_space<vmem>>, vector<1x128xf32>
    %150 = vector.broadcast %149 : vector<1x128xf32> to vector<16x128xf32>
    %151 = arith.addf %148, %150 : vector<16x128xf32>
    %c0_134 = arith.constant 0 : index
    %c0_135 = arith.constant 0 : index
    %152 = vector.load %arg6[%c0_134, %c0_135] : memref<16x128xf32, #tpu.memory_space<vmem>>, vector<16x128xf32>
    tpu.vector_store %arg6[%c0_134, %c0_135], %151 {strides = array<i32>} : memref<16x128xf32, #tpu.memory_space<vmem>>, vector<16x128xf32>,
    %153 = vector.shape_cast %151 : vector<16x128xf32> to vector<2x8x128xf32>
    %cst_136 = arith.constant dense<0.000000e+00> : vector<2x128xf32>
    %154 = vector.multi_reduction <add>, %153, %cst_136 [1] : vector<2x8x128xf32> to vector<2x128xf32>
    %c0_137 = arith.constant 0 : index
    %c0_138 = arith.constant 0 : index
    %155 = vector.load %arg5[%c0_137, %c0_138] : memref<2x1xf32, #tpu.memory_space<vmem>>, vector<2x1xf32>
    %156 = tpu.reciprocal %155 {approx = true} : vector<2x1xf32> -> vector<2x1xf32>
    %157 = vector.broadcast %156 : vector<2x1xf32> to vector<2x128xf32>
    %158 = arith.mulf %154, %157 : vector<2x128xf32>
    %c0_139 = arith.constant 0 : index
    %c0_140 = arith.constant 0 : index
    %159 = vector.load %arg7[%c0_139, %c0_140] : memref<2x128xf32, #tpu.memory_space<vmem>>, vector<2x128xf32>
    tpu.vector_store %arg7[%c0_139, %c0_140], %158 {strides = array<i32>} : memref<2x128xf32, #tpu.memory_space<vmem>>, vector<2x128xf32>,
    return
  }
  func.func @transform_1(%arg0: i32, %arg1: memref<16xi32, #tpu.memory_space<smem>>) -> (i32, i32) {
    %c0_i32 = arith.constant 0 : i32
    %c0_i32_0 = arith.constant 0 : i32
    %c0_i32_1 = arith.constant 0 : i32
    return %c0_i32, %c0_i32_0 : i32, i32
  }
  func.func @transform_2(%arg0: i32, %arg1: memref<16xi32, #tpu.memory_space<smem>>) -> (i32, i32) {
    %c0_i32 = arith.constant 0 : i32
    %c0_i32_0 = arith.constant 0 : i32
    %c0_i32_1 = arith.constant 0 : i32
    return %c0_i32, %c0_i32_0 : i32, i32
  }
  func.func @transform_3(%arg0: i32, %arg1: memref<16xi32, #tpu.memory_space<smem>>) -> (i32, i32) {
    %c0_i32 = arith.constant 0 : i32
    %c0_i32_0 = arith.constant 0 : i32
    %c0_i32_1 = arith.constant 0 : i32
    return %c0_i32, %c0_i32_0 : i32, i32
  }
  func.func @transform_4(%arg0: i32, %arg1: memref<16xi32, #tpu.memory_space<smem>>) -> (i32, i32) {
    %c0_i32 = arith.constant 0 : i32
    %c0_i32_0 = arith.constant 0 : i32
    %c0_i32_1 = arith.constant 0 : i32
    return %c0_i32, %c0_i32_0 : i32, i32
  }
  func.func @transform_5(%arg0: i32, %arg1: memref<16xi32, #tpu.memory_space<smem>>) -> (i32, i32) {
    %c0_i32 = arith.constant 0 : i32
    %c0_i32_0 = arith.constant 0 : i32
    %c0_i32_1 = arith.constant 0 : i32
    return %c0_i32, %c0_i32_0 : i32, i32
  }
}

</mosaic_0001>

<bundles_post_ra>
// kernel: tpu_custom_call.1
= control target key start
LH: loop header
LB: loop body
LE: loop exit
PB: predicated region body
PF: predicated region fallthrough
CT: control target
= control target key end

     0   :  { %s1501_s0 = inlined_call_operand.vmem [shape: s32[16], index: 0, kind: input, shape index: {}]   ;;  %s1502_s1 = inlined_call_operand.hbm [shape: f32[128,128], index: 1, kind: input, shape index: {}]   ;;  %s1503_s2 = inlined_call_operand.hbm [shape: f32[128,128], index: 2, kind: input, shape index: {}]   ;;  %s1504_s3 = inlined_call_operand.vmem [shape: f32[1,128], index: 3, kind: input, shape index: {}]   ;;  %s1505_s4 = inlined_call_operand.vmem [shape: f32[2,1], index: 4, kind: input, shape index: {}]   ;;  %s1506_s5 = inlined_call_operand.hbm [shape: f32[16,128], index: 5, kind: output, shape index: {0}]   ;;  %s1507_s6 = inlined_call_operand.hbm [shape: f32[2,128], index: 6, kind: output, shape index: {1}]  }
   0x1   :  { %s12_s23 = sshll.u32 %s1501_s0, 4  ;;  %s13_s23 = int_to_ptr.vmem [resolvable:$true] %s12_s23 }
   0x2   :  { %s714_s24 = scalar_lea.vmem %s13_s23, 16  ;;  %p719_p1 = scmp.lt.s32.totalorder %s13_s23, %s13_s23 }
   0x3   :  { %p715_p0 = scmp.ne.s32.totalorder %s13_s23, %s714_s24  ;;  %p720_p2 = scmp.lt.s32.totalorder %s714_s24, %s714_s24 }
   0x5   :  { %p721_p3 = por %p720_p2, %p719_p1 }
   0x7   :  { %p722_p4 = pnand %p721_p3, %p715_p0 }
   0x9   :  { %725 = shalt.err (!%p722_p4)  }
   0xa   :  { %s1178_s25 = smov [#allocation5]  }
   0xb   :  { %15 = dma.vmem_to_smem %s13_s23, 16, %s1178_s25, [#allocation4] }
   0xc   :  { %1138 = dma.done.wait [#allocation4], 16 }
   0xd   :  { %1139 = vsyncadd [#allocation4], 4294967280 }
   0xe   :  { %17 = sfence }
   0xf   :  { %18 = vsyncpa [#allocation7], 0 }
  0x10   :  { %19 = vsyncpa [#allocation8], 0 }
  0x11   :  { %20 = vsyncpa [#allocation11], 0  ;;  %s1179_s26 = smov [#allocation6]  }
  0x12   :  { %s26_s27 = sshll.u32 %s1179_s26, 4  ;;  %s27_s27 = int_to_ptr.vmem [resolvable:$true] %s26_s27 }
  0x13   :  { %s734_s0 = scalar_lea.vmem %s27_s27, 2048  ;;  %p739_p6 = scmp.lt.s32.totalorder %s27_s27, %s27_s27 }
  0x14   :  { %p735_p5 = scmp.ne.s32.totalorder %s27_s27, %s734_s0  ;;  %p740_p7 = scmp.lt.s32.totalorder %s734_s0, %s734_s0 }
  0x16   :  { %p741_p8 = por %p740_p7, %p739_p6 }
  0x18   :  { %p742_p9 = pnand %p741_p8, %p735_p5 }
  0x1a   :  { %745 = shalt.err (!%p742_p9)
}
  0x1b   :  { %s1180_s28 = smov 128   ;;  %s1181_s29 = smov 8  }
  0x1c   :  { %32 = dma.hbm_to_vmem [thread:$0]  %s1503_s2, 2048, %s27_s27, [#allocation7], %s1180_s28, %s1180_s28, %s1181_s29  }
  0x1d   :  { %1140 = dma.done.wait [#allocation7], 2048  }
  0x1e   :  { %1141 = vsyncadd [#allocation7], 4294965248  ;;  %s41_s8 = sld [smem:[#allocation5]]  ;;  %s1182_s9 = smov [#allocation2]  }
  0x1f   :  { %s51_s10 = sshll.u32 %s1182_s9, 4  ;;  %s1249_s11 = sld [smem:[#allocation5 + $0x1]]  ;;  %s1247_s10 = int_to_ptr.vmem [resolvable:$true] %s51_s10 }
  0x20   :  { %s1183_s12 = smov [#allocation2 + $0x1]   ;;  %s1251_s14 = sld [smem:[#allocation5 + $0x2]] }
  0x21   :  { %s67_s13 = sshll.u32 %s1183_s12, 4  ;;  %s1184_s15 = smov [#allocation2 + $0x2]   ;;  %s1253_s13 = int_to_ptr.vmem [resolvable:$true] %s67_s13 }
  0x22   :  { %s83_s16 = sshll.u32 %s1184_s15, 4  ;;  %s1255_s17 = sld [smem:[#allocation5 + $0x3]]  ;;  %s1257_s16 = int_to_ptr.vmem [resolvable:$true] %s83_s16 }
  0x23   :  { %s1185_s18 = smov [#allocation2 + $0x3]   ;;  %s1268_s27 = scalar_lea.hbm %s1502_s1, 2048 }
  0x24   :  { %s609_s2 = sshll.u32 %s41_s8, 4  ;;  %s1259_s19 = sshll.u32 %s1185_s18, 4  ;;  %s100_s19 = int_to_ptr.vmem [resolvable:$true] %s1259_s19 }
  0x25   :  { %s43_s22 = scalar_lea.hbm %s1502_s1, %s609_s2  ;;  %s611_s23 = sshll.u32 %s1249_s11, 4 }
  0x26   :  { %s746_s24 = scalar_lea.hbm %s43_s22, 16  ;;  %p749_p11 = scmp.lt.s32.totalorder %s43_s22, %s1502_s1 }
  0x27   :  { %p747_p10 = scmp.ne.s32.totalorder %s43_s22, %s746_s24  ;;  %p750_p12 = scmp.lt.s32.totalorder %s1268_s27, %s746_s24 }
  0x29   :  { %p751_p13 = por %p750_p12, %p749_p11 }
  0x2b   :  { %p752_p0 = pnand %p751_p13, %p747_p10 }
  0x2d   :  { %755 = shalt.err (!%p752_p0)  }
  0x2e   :  { %s756_s7 = scalar_lea.vmem %s1247_s10, 16  ;;  %s1277_s8 = scalar_lea.vmem %s1247_s10, 256 }
  0x2f   :  { %p757_p1 = scmp.ne.s32.totalorder %s1247_s10, %s756_s7  ;;  %p761_p2 = scmp.lt.s32.totalorder %s1247_s10, %s1247_s10 }
  0x30   :  { %p762_p3 = scmp.lt.s32.totalorder %s1277_s8, %s756_s7 }
  0x32   :  { %p763_p4 = por %p762_p3, %p761_p2 }
  0x34   :  { %p764_p5 = pnand %p763_p4, %p757_p1 }
  0x36   :  { %767 = shalt.err (!%p764_p5)  }
  0x37   :  { %54 = dma.hbm_to_vmem [thread:$0]  %s43_s22, 16, %s1247_s10, [#allocation3] }
  0x38   :  { %s57_s12 = scalar_lea.hbm %s1502_s1, %s611_s23  ;;  %s613_s15 = sshll.u32 %s1251_s14, 4 }
  0x39   :  { %s768_s2 = scalar_lea.hbm %s57_s12, 16  ;;  %p771_p7 = scmp.lt.s32.totalorder %s57_s12, %s1502_s1 }
  0x3a   :  { %p769_p6 = scmp.ne.s32.totalorder %s57_s12, %s768_s2  ;;  %p772_p8 = scmp.lt.s32.totalorder %s1268_s27, %s768_s2 }
  0x3c   :  { %p773_p9 = por %p772_p8, %p771_p7 }
  0x3e   :  { %p774_p10 = pnand %p773_p9, %p769_p6 }
  0x40   :  { %777 = shalt.err (!%p774_p10)  }
  0x41   :  { %s778_s21 = scalar_lea.vmem %s1253_s13, 16  ;;  %p783_p12 = scmp.lt.s32.totalorder %s1253_s13, %s1247_s10 }
  0x42   :  { %p779_p11 = scmp.ne.s32.totalorder %s1253_s13, %s778_s21  ;;  %p784_p13 = scmp.lt.s32.totalorder %s1277_s8, %s778_s21 }
  0x44   :  { %p785_p0 = por %p784_p13, %p783_p12 }
  0x46   :  { %p786_p1 = pnand %p785_p0, %p779_p11 }
  0x48   :  { %789 = shalt.err (!%p786_p1)  }
  0x49   :  { %70 = dma.hbm_to_vmem [thread:$0]  %s57_s12, 16, %s1253_s13, [#allocation3 + $0x1] }
  0x4a   :  { %s73_s23 = scalar_lea.hbm %s1502_s1, %s613_s15  ;;  %s615_s24 = sshll.u32 %s1255_s17, 4 }
  0x4b   :  { %s790_s25 = scalar_lea.hbm %s73_s23, 16  ;;  %p793_p3 = scmp.lt.s32.totalorder %s73_s23, %s1502_s1 }
  0x4c   :  { %p791_p2 = scmp.ne.s32.totalorder %s73_s23, %s790_s25  ;;  %p794_p4 = scmp.lt.s32.totalorder %s1268_s27, %s790_s25 }
  0x4e   :  { %p795_p5 = por %p794_p4, %p793_p3 }
  0x50   :  { %p796_p6 = pnand %p795_p5, %p791_p2 }
  0x52   :  { %799 = shalt.err (!%p796_p6)  }
  0x53   :  { %s800_s13 = scalar_lea.vmem %s1257_s16, 16  ;;  %p805_p8 = scmp.lt.s32.totalorder %s1257_s16, %s1247_s10 }
  0x54   :  { %p801_p7 = scmp.ne.s32.totalorder %s1257_s16, %s800_s13  ;;  %p806_p9 = scmp.lt.s32.totalorder %s1277_s8, %s800_s13 }
  0x56   :  { %p807_p10 = por %p806_p9, %p805_p8 }
  0x58   :  { %p808_p11 = pnand %p807_p10, %p801_p7 }
  0x5a   :  { %811 = shalt.err (!%p808_p11)  }
  0x5b   :  { %86 = dma.hbm_to_vmem [thread:$0]  %s73_s23, 16, %s1257_s16, [#allocation3 + $0x2] }
  0x5c   :  { %s89_s7 = scalar_lea.hbm %s1502_s1, %s615_s24 }
  0x5d   :  { %s812_s9 = scalar_lea.hbm %s89_s7, 16  ;;  %p815_p13 = scmp.lt.s32.totalorder %s89_s7, %s1502_s1 }
  0x5e   :  { %p813_p12 = scmp.ne.s32.totalorder %s89_s7, %s812_s9  ;;  %p816_p0 = scmp.lt.s32.totalorder %s1268_s27, %s812_s9 }
  0x60   :  { %p817_p1 = por %p816_p0, %p815_p13 }
  0x62   :  { %p818_p2 = pnand %p817_p1, %p813_p12 }
  0x64   :  { %821 = shalt.err (!%p818_p2)  }
  0x65   :  { %s822_s15 = scalar_lea.vmem %s100_s19, 16  ;;  %p827_p4 = scmp.lt.s32.totalorder %s100_s19, %s1247_s10 }
  0x66   :  { %p823_p3 = scmp.ne.s32.totalorder %s100_s19, %s822_s15  ;;  %p828_p5 = scmp.lt.s32.totalorder %s1277_s8, %s822_s15 }
  0x68   :  { %p829_p6 = por %p828_p5, %p827_p4 }
  0x6a   :  { %p830_p7 = pnand %p829_p6, %p823_p3 }
  0x6c   :  { %833 = shalt.err (!%p830_p7)  }
  0x6d   :  { %102 = dma.hbm_to_vmem [thread:$0]  %s89_s7, 16, %s100_s19, [#allocation3 + $0x3] }
  0x6e   :  { %s616_s16 = sld [smem:[#allocation5 + $0x4]]  ;;  %s1186_s2 = smov [#allocation2 + $0x4]  }
  0x6f   :  { %s115_s18 = sshll.u32 %s1186_s2, 4  ;;  %s1321_s20 = sld [smem:[#allocation5 + $0x5]]  ;;  %s116_s18 = int_to_ptr.vmem [resolvable:$true] %s115_s18 }
  0x70   :  { %s1187_s21 = smov [#allocation2 + $0x5]   ;;  %s1323_s22 = sld [smem:[#allocation5 + $0x6]] }
  0x71   :  { %s131_s14 = sshll.u32 %s1187_s21, 4  ;;  %s1188_s23 = smov [#allocation2 + $0x6]   ;;  %s1325_s14 = int_to_ptr.vmem [resolvable:$true] %s131_s14 }
  0x72   :  { %s147_s24 = sshll.u32 %s1188_s23, 4  ;;  %s1327_s25 = sld [smem:[#allocation5 + $0x7]]  ;;  %s1329_s24 = int_to_ptr.vmem [resolvable:$true] %s147_s24 }
  0x74   :  { %s617_s26 = sshll.u32 %s616_s16, 4 }
  0x75   :  { %s105_s13 = scalar_lea.hbm %s1502_s1, %s617_s26  ;;  %s619_s17 = sshll.u32 %s1321_s20, 4 }
  0x76   :  { %s834_s30 = scalar_lea.hbm %s105_s13, 16  ;;  %p837_p9 = scmp.lt.s32.totalorder %s105_s13, %s1502_s1 }
  0x77   :  { %p835_p8 = scmp.ne.s32.totalorder %s105_s13, %s834_s30  ;;  %p838_p10 = scmp.lt.s32.totalorder %s1268_s27, %s834_s30 }
  0x79   :  { %p839_p11 = por %p838_p10, %p837_p9 }
  0x7b   :  { %p840_p12 = pnand %p839_p11, %p835_p8 }
  0x7d   :  { %843 = shalt.err (!%p840_p12)  }
  0x7e   :  { %s844_s11 = scalar_lea.vmem %s116_s18, 16  ;;  %p849_p0 = scmp.lt.s32.totalorder %s116_s18, %s1247_s10 }
  0x7f   :  { %p845_p13 = scmp.ne.s32.totalorder %s116_s18, %s844_s11  ;;  %p850_p1 = scmp.lt.s32.totalorder %s1277_s8, %s844_s11 }
  0x81   :  { %p851_p2 = por %p850_p1, %p849_p0 }
  0x83   :  { %p852_p3 = pnand %p851_p2, %p845_p13 }
  0x85   :  { %855 = shalt.err (!%p852_p3)  }
  0x86   :  { %118 = dma.hbm_to_vmem [thread:$0]  %s105_s13, 16, %s116_s18, [#allocation3 + $0x4] }
  0x87   :  { %s121_s16 = scalar_lea.hbm %s1502_s1, %s619_s17  ;;  %s621_s2 = sshll.u32 %s1323_s22, 4 }
  0x88   :  { %s856_s20 = scalar_lea.hbm %s121_s16, 16  ;;  %p859_p5 = scmp.lt.s32.totalorder %s121_s16, %s1502_s1 }
  0x89   :  { %p857_p4 = scmp.ne.s32.totalorder %s121_s16, %s856_s20  ;;  %p860_p6 = scmp.lt.s32.totalorder %s1268_s27, %s856_s20 }
  0x8b   :  { %p861_p7 = por %p860_p6, %p859_p5 }
  0x8d   :  { %p862_p8 = pnand %p861_p7, %p857_p4 }
  0x8f   :  { %865 = shalt.err (!%p862_p8)  }
  0x90   :  { %s866_s18 = scalar_lea.vmem %s1325_s14, 16  ;;  %p871_p10 = scmp.lt.s32.totalorder %s1325_s14, %s1247_s10 }
  0x91   :  { %p867_p9 = scmp.ne.s32.totalorder %s1325_s14, %s866_s18  ;;  %p872_p11 = scmp.lt.s32.totalorder %s1277_s8, %s866_s18 }
  0x93   :  { %p873_p12 = por %p872_p11, %p871_p10 }
  0x95   :  { %p874_p13 = pnand %p873_p12, %p867_p9 }
  0x97   :  { %877 = shalt.err (!%p874_p13)  }
  0x98   :  { %134 = dma.hbm_to_vmem [thread:$0]  %s121_s16, 16, %s1325_s14, [#allocation3 + $0x5] }
  0x99   :  { %s137_s19 = scalar_lea.hbm %s1502_s1, %s621_s2  ;;  %s623_s0 = sshll.u32 %s1327_s25, 4 }
  0x9a   :  { %s878_s13 = scalar_lea.hbm %s137_s19, 16  ;;  %p881_p1 = scmp.lt.s32.totalorder %s137_s19, %s1502_s1 }
  0x9b   :  { %p879_p0 = scmp.ne.s32.totalorder %s137_s19, %s878_s13  ;;  %p882_p2 = scmp.lt.s32.totalorder %s1268_s27, %s878_s13 }
  0x9d   :  { %p883_p3 = por %p882_p2, %p881_p1 }
  0x9f   :  { %p884_p4 = pnand %p883_p3, %p879_p0 }
  0xa1   :  { %887 = shalt.err (!%p884_p4)  }
  0xa2   :  { %s888_s14 = scalar_lea.vmem %s1329_s24, 16  ;;  %p893_p6 = scmp.lt.s32.totalorder %s1329_s24, %s1247_s10 }
  0xa3   :  { %p889_p5 = scmp.ne.s32.totalorder %s1329_s24, %s888_s14  ;;  %p894_p7 = scmp.lt.s32.totalorder %s1277_s8, %s888_s14 }
  0xa5   :  { %p895_p8 = por %p894_p7, %p893_p6 }
  0xa7   :  { %p896_p9 = pnand %p895_p8, %p889_p5 }
  0xa9   :  { %899 = shalt.err (!%p896_p9)  }
  0xaa   :  { %150 = dma.hbm_to_vmem [thread:$0]  %s137_s19, 16, %s1329_s24, [#allocation3 + $0x6] }
  0xab   :  { %s153_s9 = scalar_lea.hbm %s1502_s1, %s623_s0  ;;  %s1189_s11 = smov [#allocation2 + $0x7]  }
  0xac   :  { %s163_s12 = sshll.u32 %s1189_s11, 4  ;;  %s624_s15 = sld [smem:[#allocation5 + $0x8]]  ;;  %s164_s12 = int_to_ptr.vmem [resolvable:$true] %s163_s12 }
  0xad   :  { %s900_s16 = scalar_lea.hbm %s153_s9, 16  ;;  %p903_p11 = scmp.lt.s32.totalorder %s153_s9, %s1502_s1 }
  0xae   :  { %p901_p10 = scmp.ne.s32.totalorder %s153_s9, %s900_s16  ;;  %p904_p12 = scmp.lt.s32.totalorder %s1268_s27, %s900_s16 }
  0xb0   :  { %p905_p13 = por %p904_p12, %p903_p11 }
  0xb2   :  { %p906_p0 = pnand %p905_p13, %p901_p10 }
  0xb4   :  { %909 = shalt.err (!%p906_p0)  }
  0xb5   :  { %s910_s21 = scalar_lea.vmem %s164_s12, 16  ;;  %p915_p2 = scmp.lt.s32.totalorder %s164_s12, %s1247_s10 }
  0xb6   :  { %p911_p1 = scmp.ne.s32.totalorder %s164_s12, %s910_s21  ;;  %p916_p3 = scmp.lt.s32.totalorder %s1277_s8, %s910_s21 }
  0xb8   :  { %p917_p4 = por %p916_p3, %p915_p2 }
  0xba   :  { %p918_p5 = pnand %p917_p4, %p911_p1 }
  0xbc   :  { %921 = shalt.err (!%p918_p5)  }
  0xbd   :  { %166 = dma.hbm_to_vmem [thread:$0]  %s153_s9, 16, %s164_s12, [#allocation3 + $0x7] }
  0xbe   :  { %s1190_s24 = smov [#allocation2 + $0x8]   ;;  %s626_s18 = sld [smem:[#allocation5 + $0x9]] }
  0xbf   :  { %s179_s23 = sshll.u32 %s1190_s24, 4  ;;  %s1191_s22 = smov [#allocation2 + $0x9]   ;;  %s180_s23 = int_to_ptr.vmem [resolvable:$true] %s179_s23 }
  0xc0   :  { %s195_s26 = sshll.u32 %s1191_s22, 4  ;;  %s1378_s19 = sld [smem:[#allocation5 + $0xa]]  ;;  %s1380_s26 = int_to_ptr.vmem [resolvable:$true] %s195_s26 }
  0xc1   :  { %s625_s0 = sshll.u32 %s624_s15, 4 }
  0xc2   :  { %s169_s30 = scalar_lea.hbm %s1502_s1, %s625_s0 }
  0xc3   :  { %s922_s14 = scalar_lea.hbm %s169_s30, 16  ;;  %p925_p7 = scmp.lt.s32.totalorder %s169_s30, %s1502_s1 }
  0xc4   :  { %p923_p6 = scmp.ne.s32.totalorder %s169_s30, %s922_s14  ;;  %p926_p8 = scmp.lt.s32.totalorder %s1268_s27, %s922_s14 }
  0xc6   :  { %p927_p9 = por %p926_p8, %p925_p7 }
  0xc8   :  { %p928_p10 = pnand %p927_p9, %p923_p6 }
  0xca   :  { %931 = shalt.err (!%p928_p10)  }
  0xcb   :  { %s932_s9 = scalar_lea.vmem %s180_s23, 16  ;;  %p937_p12 = scmp.lt.s32.totalorder %s180_s23, %s1247_s10 }
  0xcc   :  { %p933_p11 = scmp.ne.s32.totalorder %s180_s23, %s932_s9  ;;  %p938_p13 = scmp.lt.s32.totalorder %s1277_s8, %s932_s9 }
  0xce   :  { %p939_p0 = por %p938_p13, %p937_p12 }
  0xd0   :  { %p940_p1 = pnand %p939_p0, %p933_p11 }
  0xd2   :  { %943 = shalt.err (!%p940_p1)  }
  0xd3   :  { %182 = dma.hbm_to_vmem [thread:$0]  %s169_s30, 16, %s180_s23, [#allocation3 + $0x8] }
  0xd4   :  { %s627_s11 = sshll.u32 %s626_s18, 4  ;;  %s1192_s12 = smov [#allocation2 + $0xa]  }
  0xd5   :  { %s211_s15 = sshll.u32 %s1192_s12, 4  ;;  %s185_s20 = scalar_lea.hbm %s1502_s1, %s627_s11  ;;  %s1394_s15 = int_to_ptr.vmem [resolvable:$true] %s211_s15 }
  0xd6   :  { %s944_s21 = scalar_lea.hbm %s185_s20, 16  ;;  %p947_p3 = scmp.lt.s32.totalorder %s185_s20, %s1502_s1 }
  0xd7   :  { %p945_p2 = scmp.ne.s32.totalorder %s185_s20, %s944_s21  ;;  %p948_p4 = scmp.lt.s32.totalorder %s1268_s27, %s944_s21 }
  0xd9   :  { %p949_p5 = por %p948_p4, %p947_p3 }
  0xdb   :  { %p950_p6 = pnand %p949_p5, %p945_p2 }
  0xdd   :  { %953 = shalt.err (!%p950_p6)  }
  0xde   :  { %s954_s23 = scalar_lea.vmem %s1380_s26, 16  ;;  %p959_p8 = scmp.lt.s32.totalorder %s1380_s26, %s1247_s10 }
  0xdf   :  { %p955_p7 = scmp.ne.s32.totalorder %s1380_s26, %s954_s23  ;;  %p960_p9 = scmp.lt.s32.totalorder %s1277_s8, %s954_s23 }
  0xe1   :  { %p961_p10 = por %p960_p9, %p959_p8 }
  0xe3   :  { %p962_p11 = pnand %p961_p10, %p955_p7 }
  0xe5   :  { %965 = shalt.err (!%p962_p11)  }
  0xe6   :  { %198 = dma.hbm_to_vmem [thread:$0]  %s185_s20, 16, %s1380_s26, [#allocation3 + $0x9] }
  0xe7   :  { %s629_s18 = sshll.u32 %s1378_s19, 4  ;;  %s630_s0 = sld [smem:[#allocation5 + $0xb]] }
  0xe8   :  { %s201_s30 = scalar_lea.hbm %s1502_s1, %s629_s18 }
  0xe9   :  { %s966_s14 = scalar_lea.hbm %s201_s30, 16  ;;  %p969_p13 = scmp.lt.s32.totalorder %s201_s30, %s1502_s1 }
  0xea   :  { %p967_p12 = scmp.ne.s32.totalorder %s201_s30, %s966_s14  ;;  %p970_p0 = scmp.lt.s32.totalorder %s1268_s27, %s966_s14 }
  0xec   :  { %p971_p1 = por %p970_p0, %p969_p13 }
  0xee   :  { %p972_p2 = pnand %p971_p1, %p967_p12 }
  0xf0   :  { %975 = shalt.err (!%p972_p2)  }
  0xf1   :  { %s976_s26 = scalar_lea.vmem %s1394_s15, 16  ;;  %p981_p4 = scmp.lt.s32.totalorder %s1394_s15, %s1247_s10 }
  0xf2   :  { %p977_p3 = scmp.ne.s32.totalorder %s1394_s15, %s976_s26  ;;  %p982_p5 = scmp.lt.s32.totalorder %s1277_s8, %s976_s26 }
  0xf4   :  { %p983_p6 = por %p982_p5, %p981_p4 }
  0xf6   :  { %p984_p7 = pnand %p983_p6, %p977_p3 }
  0xf8   :  { %987 = shalt.err (!%p984_p7)  }
  0xf9   :  { %214 = dma.hbm_to_vmem [thread:$0]  %s201_s30, 16, %s1394_s15, [#allocation3 + $0xa] }
  0xfa   :  { %s1193_s19 = smov [#allocation2 + $0xb]   ;;  %s632_s11 = sld [smem:[#allocation5 + $0xc]] }
  0xfb   :  { %s227_s9 = sshll.u32 %s1193_s19, 4  ;;  %s1194_s12 = smov [#allocation2 + $0xc]   ;;  %s228_s9 = int_to_ptr.vmem [resolvable:$true] %s227_s9 }
  0xfc   :  { %s243_s16 = sshll.u32 %s1194_s12, 4  ;;  %s1420_s2 = sld [smem:[#allocation5 + $0xd]]  ;;  %s1422_s16 = int_to_ptr.vmem [resolvable:$true] %s243_s16 }
  0xfd   :  { %s631_s20 = sshll.u32 %s630_s0, 4 }
  0xfe   :  { %s217_s22 = scalar_lea.hbm %s1502_s1, %s631_s20 }
  0xff   :  { %s988_s23 = scalar_lea.hbm %s217_s22, 16  ;;  %p991_p9 = scmp.lt.s32.totalorder %s217_s22, %s1502_s1 }
 0x100   :  { %p989_p8 = scmp.ne.s32.totalorder %s217_s22, %s988_s23  ;;  %p992_p10 = scmp.lt.s32.totalorder %s1268_s27, %s988_s23 }
 0x102   :  { %p993_p11 = por %p992_p10, %p991_p9 }
 0x104   :  { %p994_p12 = pnand %p993_p11, %p989_p8 }
 0x106   :  { %997 = shalt.err (!%p994_p12)  }
 0x107   :  { %s998_s15 = scalar_lea.vmem %s228_s9, 16  ;;  %p1003_p0 = scmp.lt.s32.totalorder %s228_s9, %s1247_s10 }
 0x108   :  { %p999_p13 = scmp.ne.s32.totalorder %s228_s9, %s998_s15  ;;  %p1004_p1 = scmp.lt.s32.totalorder %s1277_s8, %s998_s15 }
 0x10a   :  { %p1005_p2 = por %p1004_p1, %p1003_p0 }
 0x10c   :  { %p1006_p3 = pnand %p1005_p2, %p999_p13 }
 0x10e   :  { %1009 = shalt.err (!%p1006_p3)  }
 0x10f   :  { %230 = dma.hbm_to_vmem [thread:$0]  %s217_s22, 16, %s228_s9, [#allocation3 + $0xb] }
 0x110   :  { %s633_s0 = sshll.u32 %s632_s11, 4  ;;  %s1195_s17 = smov [#allocation2 + $0xd]  }
 0x111   :  { %s259_s30 = sshll.u32 %s1195_s17, 4  ;;  %s233_s7 = scalar_lea.hbm %s1502_s1, %s633_s0  ;;  %s1436_s30 = int_to_ptr.vmem [resolvable:$true] %s259_s30 }
 0x112   :  { %s1010_s26 = scalar_lea.hbm %s233_s7, 16  ;;  %p1013_p5 = scmp.lt.s32.totalorder %s233_s7, %s1502_s1 }
 0x113   :  { %p1011_p4 = scmp.ne.s32.totalorder %s233_s7, %s1010_s26  ;;  %p1014_p6 = scmp.lt.s32.totalorder %s1268_s27, %s1010_s26 }
 0x115   :  { %p1015_p7 = por %p1014_p6, %p1013_p5 }
 0x117   :  { %p1016_p8 = pnand %p1015_p7, %p1011_p4 }
 0x119   :  { %1019 = shalt.err (!%p1016_p8)  }
 0x11a   :  { %s1020_s9 = scalar_lea.vmem %s1422_s16, 16  ;;  %p1025_p10 = scmp.lt.s32.totalorder %s1422_s16, %s1247_s10 }
 0x11b   :  { %p1021_p9 = scmp.ne.s32.totalorder %s1422_s16, %s1020_s9  ;;  %p1026_p11 = scmp.lt.s32.totalorder %s1277_s8, %s1020_s9 }
 0x11d   :  { %p1027_p12 = por %p1026_p11, %p1025_p10 }
 0x11f   :  { %p1028_p13 = pnand %p1027_p12, %p1021_p9 }
 0x121   :  { %1031 = shalt.err (!%p1028_p13)  }
 0x122   :  { %246 = dma.hbm_to_vmem [thread:$0]  %s233_s7, 16, %s1422_s16, [#allocation3 + $0xc] }
 0x123   :  { %s635_s11 = sshll.u32 %s1420_s2, 4  ;;  %s636_s20 = sld [smem:[#allocation5 + $0xe]] }
 0x124   :  { %s249_s22 = scalar_lea.hbm %s1502_s1, %s635_s11 }
 0x125   :  { %s1032_s23 = scalar_lea.hbm %s249_s22, 16  ;;  %p1035_p1 = scmp.lt.s32.totalorder %s249_s22, %s1502_s1 }
 0x126   :  { %p1033_p0 = scmp.ne.s32.totalorder %s249_s22, %s1032_s23  ;;  %p1036_p2 = scmp.lt.s32.totalorder %s1268_s27, %s1032_s23 }
 0x128   :  { %p1037_p3 = por %p1036_p2, %p1035_p1 }
 0x12a   :  { %p1038_p4 = pnand %p1037_p3, %p1033_p0 }
 0x12c   :  { %1041 = shalt.err (!%p1038_p4)  }
 0x12d   :  { %s1042_s16 = scalar_lea.vmem %s1436_s30, 16  ;;  %p1047_p6 = scmp.lt.s32.totalorder %s1436_s30, %s1247_s10 }
 0x12e   :  { %p1043_p5 = scmp.ne.s32.totalorder %s1436_s30, %s1042_s16  ;;  %p1048_p7 = scmp.lt.s32.totalorder %s1277_s8, %s1042_s16 }
 0x130   :  { %p1049_p8 = por %p1048_p7, %p1047_p6 }
 0x132   :  { %p1050_p9 = pnand %p1049_p8, %p1043_p5 }
 0x134   :  { %1053 = shalt.err (!%p1050_p9)  }
 0x135   :  { %262 = dma.hbm_to_vmem [thread:$0]  %s249_s22, 16, %s1436_s30, [#allocation3 + $0xd] }
 0x136   :  { %s1196_s2 = smov [#allocation2 + $0xe]   ;;  %s638_s0 = sld [smem:[#allocation5 + $0xf]] }
 0x137   :  { %s275_s15 = sshll.u32 %s1196_s2, 4  ;;  %s1197_s17 = smov [#allocation2 + $0xf]   ;;  %s276_s15 = int_to_ptr.vmem [resolvable:$true] %s275_s15 }
 0x138   :  { %s291_s14 = sshll.u32 %s1197_s17, 4  ;;  %s637_s25 = sshll.u32 %s636_s20, 4  ;;  %s1465_s14 = int_to_ptr.vmem [resolvable:$true] %s291_s14 }
 0x139   :  { %s265_s19 = scalar_lea.hbm %s1502_s1, %s637_s25 }
 0x13a   :  { %s1054_s12 = scalar_lea.hbm %s265_s19, 16  ;;  %p1057_p11 = scmp.lt.s32.totalorder %s265_s19, %s1502_s1 }
 0x13b   :  { %p1055_p10 = scmp.ne.s32.totalorder %s265_s19, %s1054_s12  ;;  %p1058_p12 = scmp.lt.s32.totalorder %s1268_s27, %s1054_s12 }
 0x13d   :  { %p1059_p13 = por %p1058_p12, %p1057_p11 }
 0x13f   :  { %p1060_p0 = pnand %p1059_p13, %p1055_p10 }
 0x141   :  { %1063 = shalt.err (!%p1060_p0)  }
 0x142   :  { %s1064_s30 = scalar_lea.vmem %s276_s15, 16  ;;  %p1069_p2 = scmp.lt.s32.totalorder %s276_s15, %s1247_s10 }
 0x143   :  { %p1065_p1 = scmp.ne.s32.totalorder %s276_s15, %s1064_s30  ;;  %p1070_p3 = scmp.lt.s32.totalorder %s1277_s8, %s1064_s30 }
 0x145   :  { %p1071_p4 = por %p1070_p3, %p1069_p2 }
 0x147   :  { %p1072_p5 = pnand %p1071_p4, %p1065_p1 }
 0x149   :  { %1075 = shalt.err (!%p1072_p5)  }
 0x14a   :  { %278 = dma.hbm_to_vmem [thread:$0]  %s265_s19, 16, %s276_s15, [#allocation3 + $0xe] }
 0x14b   :  { %s639_s20 = sshll.u32 %s638_s0, 4 }
 0x14c   :  { %s281_s22 = scalar_lea.hbm %s1502_s1, %s639_s20 }
 0x14d   :  { %s1076_s23 = scalar_lea.hbm %s281_s22, 16  ;;  %p1079_p7 = scmp.lt.s32.totalorder %s281_s22, %s1502_s1 }
 0x14e   :  { %p1077_p6 = scmp.ne.s32.totalorder %s281_s22, %s1076_s23  ;;  %p1080_p8 = scmp.lt.s32.totalorder %s1268_s27, %s1076_s23 }
 0x150   :  { %p1081_p9 = por %p1080_p8, %p1079_p7 }
 0x152   :  { %p1082_p10 = pnand %p1081_p9, %p1077_p6 }
 0x154   :  { %1085 = shalt.err (!%p1082_p10)  }
 0x155   :  { %s1086_s16 = scalar_lea.vmem %s1465_s14, 16  ;;  %p1091_p12 = scmp.lt.s32.totalorder %s1465_s14, %s1247_s10 }
 0x156   :  { %p1087_p11 = scmp.ne.s32.totalorder %s1465_s14, %s1086_s16  ;;  %p1092_p13 = scmp.lt.s32.totalorder %s1277_s8, %s1086_s16 }
 0x158   :  { %p1093_p0 = por %p1092_p13, %p1091_p12 }
 0x15a   :  { %p1094_p1 = pnand %p1093_p0, %p1087_p11 }
 0x15c   :  { %1097 = shalt.err (!%p1094_p1)  }
 0x15d   :  { %294 = dma.hbm_to_vmem [thread:$0]  %s281_s22, 16, %s1465_s14, [#allocation3 + $0xf] }
 0x15e   :  { %1142 = dma.done.wait [#allocation3], 16 }
 0x15f   :  { %1143 = vsyncadd [#allocation3], 4294967280 }
 0x160   :  { %1144 = dma.done.wait [#allocation3 + $0x1], 16 }
 0x161   :  { %1145 = vsyncadd [#allocation3 + $0x1], 4294967280 }
 0x162   :  { %1146 = dma.done.wait [#allocation3 + $0x2], 16 }
 0x163   :  { %1147 = vsyncadd [#allocation3 + $0x2], 4294967280 }
 0x164   :  { %1148 = dma.done.wait [#allocation3 + $0x3], 16 }
 0x165   :  { %1149 = vsyncadd [#allocation3 + $0x3], 4294967280 }
 0x166   :  { %1150 = dma.done.wait [#allocation3 + $0x4], 16 }
 0x167   :  { %1151 = vsyncadd [#allocation3 + $0x4], 4294967280 }
 0x168   :  { %1152 = dma.done.wait [#allocation3 + $0x5], 16 }
 0x169   :  { %1153 = vsyncadd [#allocation3 + $0x5], 4294967280 }
 0x16a   :  { %1154 = dma.done.wait [#allocation3 + $0x6], 16 }
 0x16b   :  { %1155 = vsyncadd [#allocation3 + $0x6], 4294967280 }
 0x16c   :  { %1156 = dma.done.wait [#allocation3 + $0x7], 16 }
 0x16d   :  { %1157 = vsyncadd [#allocation3 + $0x7], 4294967280 }
 0x16e   :  { %1158 = dma.done.wait [#allocation3 + $0x8], 16 }
 0x16f   :  { %1159 = vsyncadd [#allocation3 + $0x8], 4294967280 }
 0x170   :  { %1160 = dma.done.wait [#allocation3 + $0x9], 16 }
 0x171   :  { %1161 = vsyncadd [#allocation3 + $0x9], 4294967280 }
 0x172   :  { %1162 = dma.done.wait [#allocation3 + $0xa], 16 }
 0x173   :  { %1163 = vsyncadd [#allocation3 + $0xa], 4294967280 }
 0x174   :  { %1164 = dma.done.wait [#allocation3 + $0xb], 16 }
 0x175   :  { %1165 = vsyncadd [#allocation3 + $0xb], 4294967280 }
 0x176   :  { %1166 = dma.done.wait [#allocation3 + $0xc], 16 }
 0x177   :  { %1167 = vsyncadd [#allocation3 + $0xc], 4294967280 }
 0x178   :  { %1168 = dma.done.wait [#allocation3 + $0xd], 16 }
 0x179   :  { %1169 = vsyncadd [#allocation3 + $0xd], 4294967280 }
 0x17a   :  { %1170 = dma.done.wait [#allocation3 + $0xe], 16 }
 0x17b   :  { %1171 = vsyncadd [#allocation3 + $0xe], 4294967280 }
 0x17c   :  { %1172 = dma.done.wait [#allocation3 + $0xf], 16 }
 0x17d   :  { %1173 = vsyncadd [#allocation3 + $0xf], 4294967280  ;;  %v1198_v0 = vmov 0.0   ;;  %vm1199_vm0 = vmmov 0   ;;  %v1200_v1 = vmov 0   ;;  %v345_v2 = vld [vmem:[#allocation6 + $0x70] sm:$0xff] }
 0x17e   :  { %666 = vmatprep.subr.bf16.mxu0 %v1198_v0  ;;  %682 = vmatprep.mubr.msk.bf16.mxu0 %vm1199_vm0, %v1198_v0  ;;  %v346_v3 = vld [vmem:[#allocation6 + $0x78] sm:$0xff]  ;;  %v343_v4 = vld [vmem:[#allocation6 + $0x60] sm:$0xff]  ;;  %v344_v6 = vld [vmem:[#allocation6 + $0x68] sm:$0xff]  ;;  %s1201_s8 = smov [#allocation9]  }
 0x17f   :  { %711 = vset.pattern.permute.xlu0 %v1200_v1  ;;  %v354_v5 = vpack.c.bf16 %v346_v3, %v345_v2  ;;  %v353_v7 = vpack.c.bf16 %v344_v6, %v343_v4  ;;  %v341_v8 = vld [vmem:[#allocation6 + $0x50] sm:$0xff]  ;;  %v342_v9 = vld [vmem:[#allocation6 + $0x58] sm:$0xff]  ;;  %v339_v12 = vld [vmem:[#allocation6 + $0x40] sm:$0xff]  ;;  %s440_s2 = sshll.u32 %s1201_s8, 4  ;;  %s441_s2 = int_to_ptr.vmem [resolvable:$true] %s440_s2 }
 0x180   :  { %v417_v10 = vld [vmem:[%s1505_s4] sm:$0x3]  ;;  %v352_v11 = vpack.c.bf16 %v342_v9, %v341_v8  ;;  %v340_v13 = vld [vmem:[#allocation6 + $0x48] sm:$0xff]  ;;  %v338_v16 = vld [vmem:[#allocation6 + $0x38] sm:$0xff]  ;;  %s1098_s15 = scalar_lea.vmem %s441_s2, 256  ;;  %p1103_p3 = scmp.lt.s32.totalorder %s441_s2, %s441_s2 }
 0x181   :  { %667 = vmatpush3.bf16.msra.mxu0 %v354_v5  ;;  %712 = vrcp.f32 %v417_v10  ;;  %v351_v14 = vpack.c.bf16 %v340_v13, %v339_v12  ;;  %v337_v15 = vld [vmem:[#allocation6 + $0x30] sm:$0xff]  ;;  %v335_v18 = vld [vmem:[#allocation6 + $0x20] sm:$0xff]  ;;  %v336_v19 = vld [vmem:[#allocation6 + $0x28] sm:$0xff]  ;;  %p1099_p2 = scmp.ne.s32.totalorder %s441_s2, %s1098_s15  ;;  %p1104_p4 = scmp.lt.s32.totalorder %s1098_s15, %s1098_s15 }
 0x182   :  { %668 = vmatprep.subr.bf16.mxu0 %v1198_v0  ;;  %v350_v17 = vpack.c.bf16 %v338_v16, %v337_v15  ;;  %v349_v20 = vpack.c.bf16 %v336_v19, %v335_v18  ;;  %v333_v22 = vld [vmem:[#allocation6 + $0x10] sm:$0xff]  ;;  %v334_v23 = vld [vmem:[#allocation6 + $0x18] sm:$0xff]  ;;  %v331_v25 = vld [vmem:[#allocation6] sm:$0xff] }
 0x183   :  { %v348_v24 = vpack.c.bf16 %v334_v23, %v333_v22  ;;  %v332_v26 = vld [vmem:[#allocation6 + $0x8] sm:$0xff]  ;;  %v328_v28 = vld [vmem:[#allocation2] sm:$0xff]  ;;  %v329_v29 = vld [vmem:[#allocation2 + $0x8] sm:$0xff]  ;;  %p1105_p5 = por %p1104_p4, %p1103_p3 }
 0x184   :  { %v347_v27 = vpack.c.bf16 %v332_v26, %v331_v25  ;;  %v330_v30 = vpack.c.bf16 %v329_v29, %v328_v28  ;;  %v640_v31 = vld [vmem:[%s1504_s3] ss:$0 sm:$0xff] }
 0x185   :  { %669 = vmatpush3.bf16.msra.mxu0 %v353_v7  ;;  %p1106_p6 = pnand %p1105_p5, %p1099_p2 }
 0x186   :  { %670 = vmatprep.subr.bf16.mxu0 %v1198_v0 }
 0x189   :  { %671 = vmatpush3.bf16.msra.mxu0 %v352_v11 }
 0x18a   :  { %672 = vmatprep.subr.bf16.mxu0 %v1198_v0 }
 0x18d   :  { %673 = vmatpush3.bf16.msra.mxu0 %v351_v14 }
 0x18e   :  { %674 = vmatprep.subr.bf16.mxu0 %v1198_v0  ;;  %v713_v21 = vpop.eup %712 }
 0x18f   :  { %421 = vperm.xlu0 %711, %v713_v21  }
 0x191   :  { %675 = vmatpush3.bf16.msra.mxu0 %v350_v17 }
 0x192   :  { %676 = vmatprep.subr.bf16.mxu0 %v1198_v0 }
 0x195   :  { %677 = vmatpush3.bf16.msra.mxu0 %v349_v20 }
 0x196   :  { %678 = vmatprep.subr.bf16.mxu0 %v1198_v0 }
 0x199   :  { %679 = vmatpush3.bf16.msra.mxu0 %v348_v24 }
 0x19a   :  { %680 = vmatprep.subr.bf16.mxu0 %v1198_v0 }
 0x19d   :  { %681 = vmatpush3.bf16.msra.mxu0 %v347_v27 }
 0x1a0   :  { %683 = vmatmul.mubr.bf16.vlgmr.msra.gmra.mxu0 %v330_v30 }
 0x260   :  { %v396_v32 = vpop.f32.mrf.mxu0 }
 0x261   :  { %v397_v33 = vadd.f32 %v640_v31, %v396_v32 }
 0x262   :  { %v684_v34 = vpop.f32.mrf.mxu0 }
 0x263   :  { %v405_v35 = vrot.slane %v397_v33, 4  ;;  %403 = vst [vmem:[#allocation9] sm:$0xff] %v397_v33 }
 0x264   :  { %v399_v36 = vpop.f32.mrf.mxu0 }
 0x265   :  { %v406_v37 = vadd.f32 %v405_v35, %v397_v33  ;;  %v400_v38 = vadd.f32 %v640_v31, %v399_v36 }
 0x266   :  { %v685_v39 = vpop.f32.mrf.mxu0 }
 0x267   :  { %v411_v40 = vrot.slane %v400_v38, 4  ;;  %404 = vst [vmem:[#allocation9 + $0x8] sm:$0xff] %v400_v38  ;;  %v407_v41 = vrot.slane %v406_v37, 2 }
 0x268   :  { %1109 = shalt.err (!%p1106_p6)
}
 0x269   :  { %446 = dma.vmem_to_hbm [thread:$0]  %s441_s2, 256, %s1506_s5, [#allocation8], %s1180_s28, %s1180_s28, %s1181_s29   ;;  %v412_v42 = vadd.f32 %v411_v40, %v400_v38  ;;  %v408_v43 = vadd.f32 %v407_v41, %v406_v37  ;;  %v422_v47 = vpop.permute.xlu0 %421  ;;  %vm431_vm1 = vcmask 1041409  }
 0x26a   :  { %v423_v49 = vrot.slane %v422_v47, 1  ;;  %s1202_s17 = smov [#allocation10]  }
 0x26b   :  { %v413_v44 = vrot.slane %v412_v42, 2  ;;  %v409_v45 = vrot.slane %v408_v43, 1  ;;  %s453_s14 = sshll.u32 %s1202_s17, 4  ;;  %s454_s14 = int_to_ptr.vmem [resolvable:$true] %s453_s14 }
 0x26c   :  { %s1118_s5 = scalar_lea.vmem %s454_s14, 32  ;;  %p1123_p8 = scmp.lt.s32.totalorder %s454_s14, %s454_s14 }
 0x26d   :  { %v414_v46 = vadd.f32 %v413_v44, %v412_v42  ;;  %v410_v50 = vadd.f32 %v409_v45, %v408_v43  ;;  %p1119_p7 = scmp.ne.s32.totalorder %s454_s14, %s1118_s5  ;;  %p1124_p9 = scmp.lt.s32.totalorder %s1118_s5, %s1118_s5 }
 0x26f   :  { %v415_v48 = vrot.slane %v414_v46, 1  ;;  %v426_v53 = vmul.f32 %v422_v47, %v410_v50  ;;  %p1125_p10 = por %p1124_p9, %p1123_p8 }
 0x271   :  { %v416_v51 = vadd.f32 %v415_v48, %v414_v46  ;;  %p1126_p11 = pnand %p1125_p10, %p1119_p7 }
 0x273   :  { %v427_v52 = vmul.f32 %v423_v49, %v416_v51 }
 0x275   :  { %v430_v54 = vrot.slane %v427_v52, 7 }
 0x277   :  { %v432_v55 = vsel %vm431_vm1, %v430_v54, %v426_v53 }
 0x278   :  { %434 = vst [vmem:[#allocation10] sm:$0x3] %v432_v55 }
 0x279   :  { %1129 = shalt.err (!%p1126_p11)
}
 0x27a   :  { %456 = dma.vmem_to_hbm [thread:$0]  %s454_s14, 32, %s1507_s6, [#allocation11]  }
 0x27b   :  { %1174 = dma.done.wait [#allocation8], 256  }
 0x27c   :  { %1175 = vsyncadd [#allocation8], 4294967040 }
 0x27d   :  { %1176 = dma.done.wait [#allocation11], 32  }
 0x27e   :  { %1177 = vsyncadd [#allocation11], 4294967264 }
 0x27f   :  { %463 = vsyncpa [#allocation7], 1 }
 0x280   :  { %464 = vsyncpa [#allocation8], 1 }
 0x281   :  { %465 = vsyncpa [#allocation11], 1 }
 0x282   :  { %466 = vsyncmov [#allocation3] }
 0x285   :  { %s467_s25 = vpop.sfrf %466 }
 0x286   :  { %p641_p12 = scmp.ne.s32.totalorder %s467_s25, 0 }
 0x288   :  { %471 = shalt.err (%p641_p12)  }
 0x289   :  { %473 = vsyncmov [#allocation3 + $0x1] }
 0x28c   :  { %s474_s7 = vpop.sfrf %473 }
 0x28d   :  { %p642_p13 = scmp.ne.s32.totalorder %s474_s7, 0 }
 0x28f   :  { %478 = shalt.err (%p642_p13)  }
 0x290   :  { %480 = vsyncmov [#allocation3 + $0x2] }
 0x293   :  { %s481_s26 = vpop.sfrf %480 }
 0x294   :  { %p643_p0 = scmp.ne.s32.totalorder %s481_s26, 0 }
 0x296   :  { %485 = shalt.err (%p643_p0)  }
 0x297   :  { %487 = vsyncmov [#allocation3 + $0x3] }
 0x29a   :  { %s488_s6 = vpop.sfrf %487 }
 0x29b   :  { %p644_p1 = scmp.ne.s32.totalorder %s488_s6, 0 }
 0x29d   :  { %492 = shalt.err (%p644_p1)  }
 0x29e   :  { %494 = vsyncmov [#allocation3 + $0x4] }
 0x2a1   :  { %s495_s19 = vpop.sfrf %494 }
 0x2a2   :  { %p645_p2 = scmp.ne.s32.totalorder %s495_s19, 0 }
 0x2a4   :  { %499 = shalt.err (%p645_p2)  }
 0x2a5   :  { %501 = vsyncmov [#allocation3 + $0x5] }
 0x2a8   :  { %s502_s12 = vpop.sfrf %501 }
 0x2a9   :  { %p646_p3 = scmp.ne.s32.totalorder %s502_s12, 0 }
 0x2ab   :  { %506 = shalt.err (%p646_p3)  }
 0x2ac   :  { %508 = vsyncmov [#allocation3 + $0x6] }
 0x2af   :  { %s509_s9 = vpop.sfrf %508 }
 0x2b0   :  { %p647_p4 = scmp.ne.s32.totalorder %s509_s9, 0 }
 0x2b2   :  { %513 = shalt.err (%p647_p4)  }
 0x2b3   :  { %515 = vsyncmov [#allocation3 + $0x7] }
 0x2b6   :  { %s516_s11 = vpop.sfrf %515 }
 0x2b7   :  { %p648_p5 = scmp.ne.s32.totalorder %s516_s11, 0 }
 0x2b9   :  { %520 = shalt.err (%p648_p5)  }
 0x2ba   :  { %522 = vsyncmov [#allocation3 + $0x8] }
 0x2bd   :  { %s523_s30 = vpop.sfrf %522 }
 0x2be   :  { %p649_p6 = scmp.ne.s32.totalorder %s523_s30, 0 }
 0x2c0   :  { %527 = shalt.err (%p649_p6)  }
 0x2c1   :  { %529 = vsyncmov [#allocation3 + $0x9] }
 0x2c4   :  { %s530_s20 = vpop.sfrf %529 }
 0x2c5   :  { %p650_p7 = scmp.ne.s32.totalorder %s530_s20, 0 }
 0x2c7   :  { %534 = shalt.err (%p650_p7)  }
 0x2c8   :  { %536 = vsyncmov [#allocation3 + $0xa] }
 0x2cb   :  { %s537_s21 = vpop.sfrf %536 }
 0x2cc   :  { %p651_p8 = scmp.ne.s32.totalorder %s537_s21, 0 }
 0x2ce   :  { %541 = shalt.err (%p651_p8)  }
 0x2cf   :  { %543 = vsyncmov [#allocation3 + $0xb] }
 0x2d2   :  { %s544_s24 = vpop.sfrf %543 }
 0x2d3   :  { %p652_p9 = scmp.ne.s32.totalorder %s544_s24, 0 }
 0x2d5   :  { %548 = shalt.err (%p652_p9)  }
 0x2d6   :  { %550 = vsyncmov [#allocation3 + $0xc] }
 0x2d9   :  { %s551_s22 = vpop.sfrf %550 }
 0x2da   :  { %p653_p10 = scmp.ne.s32.totalorder %s551_s22, 0 }
 0x2dc   :  { %555 = shalt.err (%p653_p10)  }
 0x2dd   :  { %557 = vsyncmov [#allocation3 + $0xd] }
 0x2e0   :  { %s558_s23 = vpop.sfrf %557 }
 0x2e1   :  { %p654_p11 = scmp.ne.s32.totalorder %s558_s23, 0 }
 0x2e3   :  { %562 = shalt.err (%p654_p11)  }
 0x2e4   :  { %564 = vsyncmov [#allocation3 + $0xe] }
 0x2e7   :  { %s565_s18 = vpop.sfrf %564 }
 0x2e8   :  { %p655_p12 = scmp.ne.s32.totalorder %s565_s18, 0 }
 0x2ea   :  { %569 = shalt.err (%p655_p12)  }
 0x2eb   :  { %571 = vsyncmov [#allocation3 + $0xf] }
 0x2ee   :  { %s572_s13 = vpop.sfrf %571 }
 0x2ef   :  { %p656_p13 = scmp.ne.s32.totalorder %s572_s13, 0 }
 0x2f1   :  { %576 = shalt.err (%p656_p13)  }

</bundles_post_ra>
